<compile_context>
chip_gen: v6e
topology: v6e:2x2x1
jax: 0.10.0
libtpu: 0.0.40
codegen_flags: <defaults>
</compile_context>

<pallas_src>
import functools

import jax
import jax.numpy as jnp
from jax import lax
from jax.experimental import pallas as pl
from jax.experimental.pallas import tpu as pltpu


def nlm_kernel(ids_ref,        # SMEM scalar-prefetch: (N,) int32; masked tokens -> zero-row index
               emb_rows_ref,   # HBM (pl.ANY): (V_pad, D) f32 table, per-row DMA gather source
               emb_t_ref,      # VMEM: (D, tile_v) bf16 streamed (pre-transposed) table block
               hid_ref,        # out VMEM: (tile_t, D) f32   last_hidden_state block
               logit_ref,      # out VMEM: (tile_t, tile_v) bf16 logits block
               hid_f32,        # scratch VMEM: (2, tile_t, D) f32  double-buffered gathered rows
               hid_b16,        # scratch VMEM: (tile_t, D) bf16    current-tile matmul LHS
               gather_sem,     # DMA semaphores: one per gather slot
               *, tile_t):
    c = pl.program_id(0)      # chain index (explicit megacore split)
    i = pl.program_id(1)      # token-tile index within this chain
    j = pl.program_id(2)      # vocab-tile index
    tpc = pl.num_programs(1)  # token tiles per chain

    def issue_rows(chain_tile, slot):
        # One (1, D) row DMA per token of token tile `chain_tile` of this chain.
        base = (c * tpc + chain_tile) * tile_t

        def body(t, carry):
            pltpu.make_async_copy(
                emb_rows_ref.at[pl.ds(ids_ref[base + t], 1), :],
                hid_f32.at[slot, pl.ds(t, 1), :],
                gather_sem.at[slot],
            ).start()
            return carry

        lax.fori_loop(0, tile_t, body, 0)

    def drain_rows(slot):
        # Wait for exactly tile_t row copies on this slot.  The wait descriptor only
        # needs the transfer size, so we use constant indices: no ids_ref scalar reads
        # interleaved with .wait() (keeps SMEM sst->sld forwarding clean).
        def body(t, carry):
            pltpu.make_async_copy(
                emb_rows_ref.at[pl.ds(0, 1), :],
                hid_f32.at[slot, pl.ds(0, 1), :],
                gather_sem.at[slot],
            ).wait()
            return carry

        lax.fori_loop(0, tile_t, body, 0)

    @pl.when(j == 0)
    def _new_token_tile():
        slot = i % 2

        # Prime the chain: the first token tile of this chain has nobody to prefetch
        # it, so its gather is exposed (once per chain).
        @pl.when(i == 0)
        def _():
            issue_rows(0, 0)

        # Prefetch the NEXT token tile of this chain; its DMAs overlap this tile's
        # whole vocab loop.  All ids_ref scalar reads happen before any .wait().
        @pl.when(i + 1 < tpc)
        def _():
            issue_rows(i + 1, (i + 1) % 2)

        # Drain this tile's rows (already in flight since the previous token tile).
        drain_rows(slot)

        rows = hid_f32[slot]
        hid_ref[...] = rows                           # exact f32 hidden (masked rows are 0)
        hid_b16[...] = rows.astype(jnp.bfloat16)      # MXU LHS for this tile's vocab loop

    # Tied-weight logits block: canonical (tile_t, D) @ (D, tile_v) on the MXU,
    # f32 accumulation, lane-dense bf16 writeback.
    logit_ref[...] = jnp.dot(
        hid_b16[...], emb_t_ref[...],
        preferred_element_type=jnp.float32).astype(logit_ref.dtype)


def neural_language_model_forward(input_ids, attention_mask, emb_table,
                                  *, tile_t=1024, tile_v=2048):
    """input_ids: [B, S] int; attention_mask: [B, S] int or None; emb_table: [V, D] float."""
    B, S = input_ids.shape
    V, D = emb_table.shape
    N = B * S
    tile_t = min(tile_t, N)
    tile_v = min(tile_v, V)
    assert N % tile_t == 0, "token count must be divisible by the token tile"
    assert V % tile_v == 0, "vocab size must be divisible by the vocab tile"
    assert D % 128 == 0 and tile_v % 128 == 0 and tile_t % 8 == 0

    if attention_mask is None:
        attention_mask = jnp.ones((B, S), dtype=jnp.int32)

    # Fold the mask into the ids: masked tokens gather an appended all-zero row, so the
    # gather itself produces hidden == Embedding[ids] * mask.  Single (N,) int32 array
    # in SMEM (bounded scalar-prefetch footprint, half the scalar loads).
    ids_flat = jnp.where(attention_mask.reshape(N) != 0,
                         input_ids.reshape(N), V).astype(jnp.int32)

    emb_f32 = emb_table.astype(jnp.float32)
    emb_rows = jnp.concatenate(                      # gather source: exact f32 rows + zero rows
        [emb_f32, jnp.zeros((8, D), jnp.float32)], axis=0)
    emb_t_b16 = emb_f32.astype(jnp.bfloat16).T       # (D, V): one-time transpose -> canonical RHS

    num_token_tiles = N // tile_t
    # Explicit megacore split: the "chain" axis is the only parallel axis, so each
    # TensorCore owns a self-contained prefetch chain (no cross-core sem dependence).
    chains = 2 if (num_token_tiles >= 2 and num_token_tiles % 2 == 0) else 1
    tpc = num_token_tiles // chains
    grid = (chains, tpc, V // tile_v)

    flops = 2 * N * V * D
    bytes_accessed = (
        4 * N                            # packed ids
        + N * D * 4                      # gathered f32 embedding rows
        + num_token_tiles * V * D * 2    # bf16 table re-streamed once per token tile
        + N * D * 4                      # hidden writeback
        + N * V * 2)                     # logits writeback

    hidden_flat, logits_flat = pl.pallas_call(
        functools.partial(nlm_kernel, tile_t=tile_t),
        out_shape=(
            jax.ShapeDtypeStruct((N, D), jnp.float32),
            jax.ShapeDtypeStruct((N, V), jnp.bfloat16),
        ),
        grid_spec=pltpu.PrefetchScalarGridSpec(
            num_scalar_prefetch=1,
            grid=grid,
            in_specs=[
                pl.BlockSpec(memory_space=pl.ANY),                         # f32 table (HBM, gather)
                pl.BlockSpec((D, tile_v), lambda c, i, j, ids: (0, j)),    # bf16 (D, tile_v) stream
            ],
            out_specs=[
                pl.BlockSpec((tile_t, D), lambda c, i, j, ids: (c * tpc + i, 0)),       # hidden
                pl.BlockSpec((tile_t, tile_v), lambda c, i, j, ids: (c * tpc + i, j)),  # logits
            ],
            scratch_shapes=[
                pltpu.VMEM((2, tile_t, D), jnp.float32),   # double-buffered gathered rows
                pltpu.VMEM((tile_t, D), jnp.bfloat16),     # current-tile matmul LHS
                pltpu.SemaphoreType.DMA((2,)),             # one DMA sem per gather slot
            ],
        ),
        compiler_params=pltpu.CompilerParams(
            dimension_semantics=("parallel", "arbitrary", "arbitrary"),
            vmem_limit_bytes=48 * 1024 * 1024,   # <= v7x's 64 MiB; default tiles use ~15 MiB
        ),
        cost_estimate=pl.CostEstimate(
            flops=flops, transcendentals=0, bytes_accessed=bytes_accessed),
    )(ids_flat, emb_rows, emb_t_b16)

    return {
        "last_hidden_state": hidden_flat.reshape(B, S, D),
        "logits": logits_flat.reshape(B, S, V),
    }


if __name__ == "__main__":
    # Small test shapes; tiles shrunk below the production defaults so every code path
    # is exercised: grid = (2 chains, 3 token tiles per chain, 4 vocab tiles).
    B, S = 2, 768        # N = 1536 tokens -> 6 token tiles of 256
    V, D = 2048, 256     # 4 vocab tiles of 512

    key = jax.random.PRNGKey(0)
    k_emb, k_ids = jax.random.split(key)

    emb_table = jax.random.normal(k_emb, (V, D), dtype=jnp.float32) * 0.02
    input_ids = jax.random.randint(k_ids, (B, S), minval=0, maxval=V, dtype=jnp.int32)
    attention_mask = jnp.ones((B, S), dtype=jnp.int32).at[:, -32:].set(0)  # pad last 32 tokens

    out = neural_language_model_forward(input_ids, attention_mask, emb_table,
                                        tile_t=256, tile_v=512)
    out = jax.block_until_ready(out)

    # Pure-JAX reference.
    mask_f = attention_mask[..., None].astype(jnp.float32)
    hid_ref = jnp.take(emb_table, input_ids, axis=0) * mask_f
    log_ref = jnp.einsum(
        "bsd,vd->bsv",
        hid_ref.astype(jnp.bfloat16).astype(jnp.float32),
        emb_table.astype(jnp.bfloat16).astype(jnp.float32))

    assert jnp.allclose(out["last_hidden_state"], hid_ref, atol=1e-6)
    assert jnp.allclose(out["logits"].astype(jnp.float32), log_ref, atol=2e-3)

    # TODO(synk): forward() in the PyTorch class is abstract; embedding + tied-weight
    # projection is the canonical concrete realization implied by NeuralModelConfig.
    print("KERNEL_OK")
</pallas_src>

<mosaic_0001>
module attributes {stable_mosaic.version = 11 : i64} {
  func.func @nlm_kernel(%arg0: i32, %arg1: i32, %arg2: i32, %arg3: memref<1536xi32, #tpu.memory_space<smem>>, %arg4: memref<2056x256xf32, #tpu.memory_space<any>>, %arg5: memref<256x512xbf16, #tpu.memory_space<vmem>>, %arg6: memref<256x256xf32, #tpu.memory_space<vmem>>, %arg7: memref<256x512xbf16, #tpu.memory_space<vmem>>, %arg8: memref<2x256x256xf32, #tpu.memory_space<vmem>>, %arg9: memref<256x256xbf16, #tpu.memory_space<vmem>>, %arg10: memref<2x!tpu.dma_semaphore, #tpu.memory_space<semaphore_mem>>) attributes {dimension_semantics = [#tpu.dimension_semantics<parallel>, #tpu.dimension_semantics<arbitrary>, #tpu.dimension_semantics<arbitrary>], iteration_bounds = array<i64: 2, 3, 4>, scalar_prefetch = 1 : i64, scratch_operands = 3 : i64, tpu.core_type = #tpu.core_type<tc>, window_params = [{}, {transform_indices = @transform_1, window_bounds = array<i64: 256, 512>}, {transform_indices = @transform_2, window_bounds = array<i64: 256, 256>}, {transform_indices = @transform_3, window_bounds = array<i64: 256, 512>}]} {
    %c0_i32 = arith.constant 0 : i32
    %0 = arith.cmpi eq, %arg2, %c0_i32 : i32
    %1 = arith.extui %0 : i1 to i32
    %c0_i32_0 = arith.constant 0 : i32
    %2 = arith.cmpi ne, %1, %c0_i32_0 : i32
    scf.if %2 {
      %c2_i32 = arith.constant 2 : i32
      %c0_i32_6 = arith.constant 0 : i32
      %8 = arith.cmpi eq, %c2_i32, %c0_i32_6 : i32
      %c1_i32 = arith.constant 1 : i32
      %9 = arith.select %8, %c1_i32, %c2_i32 : i32
      %10 = arith.remsi %arg1, %9 : i32
      %c0_i32_7 = arith.constant 0 : i32
      %11 = arith.cmpi ne, %10, %c0_i32_7 : i32
      %c0_i32_8 = arith.constant 0 : i32
      %12 = arith.cmpi slt, %10, %c0_i32_8 : i32
      %c0_i32_9 = arith.constant 0 : i32
      %13 = arith.cmpi slt, %9, %c0_i32_9 : i32
      %14 = arith.xori %12, %13 : i1
      %15 = arith.andi %14, %11 : i1
      %16 = arith.addi %10, %9 : i32
      %17 = arith.select %15, %16, %10 : i32
      %c0_i32_10 = arith.constant 0 : i32
      %18 = arith.cmpi eq, %arg1, %c0_i32_10 : i32
      %19 = arith.extui %18 : i1 to i32
      %c0_i32_11 = arith.constant 0 : i32
      %20 = arith.cmpi ne, %19, %c0_i32_11 : i32
      scf.if %20 {
        %c3_i32_22 = arith.constant 3 : i32
        %32 = arith.muli %arg0, %c3_i32_22 : i32
        %c0_i32_23 = arith.constant 0 : i32
        %33 = arith.addi %32, %c0_i32_23 : i32
        %c256_i32_24 = arith.constant 256 : i32
        %34 = arith.muli %33, %c256_i32_24 : i32
        %c0_i32_25 = arith.constant 0 : i32
        %c256_i32_26 = arith.constant 256 : i32
        %35 = arith.addi %c0_i32_25, %c256_i32_26 : i32
        %c1_i32_27 = arith.constant 1 : i32
        scf.for %arg11 = %c0_i32_25 to %35 step %c1_i32_27  : i32 {
          %36 = arith.addi %34, %arg11 : i32
          %37 = arith.index_cast %36 : i32 to index
          %38 = memref.load %arg3[%37] : memref<1536xi32, #tpu.memory_space<smem>>
          %c0_i32_29 = arith.constant 0 : i32
          %c0_i32_30 = arith.constant 0 : i32
          %c0_i32_31 = arith.constant 0 : i32
          %39 = tpu.memref_slice %arg4[%38, %c0_i32_31] : memref<2056x256xf32, #tpu.memory_space<any>> -> memref<1x256xf32, #tpu.memory_space<any>>
          %c0_i32_32 = arith.constant 0 : i32
          %40 = tpu.memref_slice %arg8[%c0_i32_29, %arg11, %c0_i32_32] : memref<2x256x256xf32, #tpu.memory_space<vmem>> -> memref<1x1x256xf32, #tpu.memory_space<vmem>>
          %41 = tpu.memref_squeeze %40 : memref<1x1x256xf32, #tpu.memory_space<vmem>> -> memref<1x256xf32, #tpu.memory_space<vmem>>
          %42 = tpu.memref_slice %arg10[%c0_i32_30] : memref<2x!tpu.dma_semaphore, #tpu.memory_space<semaphore_mem>> -> memref<1x!tpu.dma_semaphore, #tpu.memory_space<semaphore_mem>>
          %43 = tpu.memref_squeeze %42 : memref<1x!tpu.dma_semaphore, #tpu.memory_space<semaphore_mem>> -> memref<!tpu.dma_semaphore, #tpu.memory_space<semaphore_mem>>
          tpu.enqueue_dma source(%39 : memref<1x256xf32, #tpu.memory_space<any>>) target(%41 : memref<1x256xf32, #tpu.memory_space<vmem>>) target_semaphore(%43 : memref<!tpu.dma_semaphore, #tpu.memory_space<semaphore_mem>>)
        }
        %c256_i32_28 = arith.constant 256 : i32
      } else {
      }
      %c1_i32_12 = arith.constant 1 : i32
      %21 = arith.addi %arg1, %c1_i32_12 : i32
      %c3_i32 = arith.constant 3 : i32
      %22 = arith.cmpi slt, %21, %c3_i32 : i32
      %23 = arith.extui %22 : i1 to i32
      %c0_i32_13 = arith.constant 0 : i32
      %24 = arith.cmpi ne, %23, %c0_i32_13 : i32
      scf.if %24 {
        %c1_i32_22 = arith.constant 1 : i32
        %32 = arith.addi %arg1, %c1_i32_22 : i32
        %c1_i32_23 = arith.constant 1 : i32
        %33 = arith.addi %arg1, %c1_i32_23 : i32
        %c2_i32_24 = arith.constant 2 : i32
        %c0_i32_25 = arith.constant 0 : i32
        %34 = arith.cmpi eq, %c2_i32_24, %c0_i32_25 : i32
        %c1_i32_26 = arith.constant 1 : i32
        %35 = arith.select %34, %c1_i32_26, %c2_i32_24 : i32
        %36 = arith.remsi %33, %35 : i32
        %c0_i32_27 = arith.constant 0 : i32
        %37 = arith.cmpi ne, %36, %c0_i32_27 : i32
        %c0_i32_28 = arith.constant 0 : i32
        %38 = arith.cmpi slt, %36, %c0_i32_28 : i32
        %c0_i32_29 = arith.constant 0 : i32
        %39 = arith.cmpi slt, %35, %c0_i32_29 : i32
        %40 = arith.xori %38, %39 : i1
        %41 = arith.andi %40, %37 : i1
        %42 = arith.addi %36, %35 : i32
        %43 = arith.select %41, %42, %36 : i32
        %c3_i32_30 = arith.constant 3 : i32
        %44 = arith.muli %arg0, %c3_i32_30 : i32
        %45 = arith.addi %44, %32 : i32
        %c256_i32_31 = arith.constant 256 : i32
        %46 = arith.muli %45, %c256_i32_31 : i32
        %c0_i32_32 = arith.constant 0 : i32
        %c256_i32_33 = arith.constant 256 : i32
        %47 = arith.addi %c0_i32_32, %c256_i32_33 : i32
        %c1_i32_34 = arith.constant 1 : i32
        scf.for %arg11 = %c0_i32_32 to %47 step %c1_i32_34  : i32 {
          %48 = arith.addi %46, %arg11 : i32
          %49 = arith.index_cast %48 : i32 to index
          %50 = memref.load %arg3[%49] : memref<1536xi32, #tpu.memory_space<smem>>
          %c0_i32_36 = arith.constant 0 : i32
          %51 = tpu.memref_slice %arg4[%50, %c0_i32_36] : memref<2056x256xf32, #tpu.memory_space<any>> -> memref<1x256xf32, #tpu.memory_space<any>>
          %c0_i32_37 = arith.constant 0 : i32
          %52 = tpu.memref_slice %arg8[%43, %arg11, %c0_i32_37] : memref<2x256x256xf32, #tpu.memory_space<vmem>> -> memref<1x1x256xf32, #tpu.memory_space<vmem>>
          %53 = tpu.memref_squeeze %52 : memref<1x1x256xf32, #tpu.memory_space<vmem>> -> memref<1x256xf32, #tpu.memory_space<vmem>>
          %54 = tpu.memref_slice %arg10[%43] : memref<2x!tpu.dma_semaphore, #tpu.memory_space<semaphore_mem>> -> memref<1x!tpu.dma_semaphore, #tpu.memory_space<semaphore_mem>>
          %55 = tpu.memref_squeeze %54 : memref<1x!tpu.dma_semaphore, #tpu.memory_space<semaphore_mem>> -> memref<!tpu.dma_semaphore, #tpu.memory_space<semaphore_mem>>
          tpu.enqueue_dma source(%51 : memref<1x256xf32, #tpu.memory_space<any>>) target(%53 : memref<1x256xf32, #tpu.memory_space<vmem>>) target_semaphore(%55 : memref<!tpu.dma_semaphore, #tpu.memory_space<semaphore_mem>>)
        }
        %c256_i32_35 = arith.constant 256 : i32
      } else {
      }
      %c0_i32_14 = arith.constant 0 : i32
      %c256_i32 = arith.constant 256 : i32
      %25 = arith.addi %c0_i32_14, %c256_i32 : i32
      %c1_i32_15 = arith.constant 1 : i32
      scf.for %arg11 = %c0_i32_14 to %25 step %c1_i32_15  : i32 {
        %c0_i32_22 = arith.constant 0 : i32
        %c0_i32_23 = arith.constant 0 : i32
        %32 = tpu.memref_slice %arg4[%c0_i32_22, %c0_i32_23] : memref<2056x256xf32, #tpu.memory_space<any>> -> memref<1x256xf32, #tpu.memory_space<any>>
        %c0_i32_24 = arith.constant 0 : i32
        %c0_i32_25 = arith.constant 0 : i32
        %33 = tpu.memref_slice %arg8[%17, %c0_i32_24, %c0_i32_25] : memref<2x256x256xf32, #tpu.memory_space<vmem>> -> memref<1x1x256xf32, #tpu.memory_space<vmem>>
        %34 = tpu.memref_squeeze %33 : memref<1x1x256xf32, #tpu.memory_space<vmem>> -> memref<1x256xf32, #tpu.memory_space<vmem>>
        %35 = tpu.memref_slice %arg10[%17] : memref<2x!tpu.dma_semaphore, #tpu.memory_space<semaphore_mem>> -> memref<1x!tpu.dma_semaphore, #tpu.memory_space<semaphore_mem>>
        %36 = tpu.memref_squeeze %35 : memref<1x!tpu.dma_semaphore, #tpu.memory_space<semaphore_mem>> -> memref<!tpu.dma_semaphore, #tpu.memory_space<semaphore_mem>>
        tpu.wait_dma2 semaphore(%36 : memref<!tpu.dma_semaphore, #tpu.memory_space<semaphore_mem>>) src(%32 : memref<1x256xf32, #tpu.memory_space<any>>) dst(%34 : memref<1x256xf32, #tpu.memory_space<vmem>>)
      }
      %26 = arith.index_cast %17 : i32 to index
      %c0_16 = arith.constant 0 : index
      %c0_17 = arith.constant 0 : index
      %27 = vector.load %arg8[%26, %c0_16, %c0_17] : memref<2x256x256xf32, #tpu.memory_space<vmem>>, vector<1x256x256xf32>
      %28 = vector.shape_cast %27 : vector<1x256x256xf32> to vector<256x256xf32>
      %c0_18 = arith.constant 0 : index
      %c0_19 = arith.constant 0 : index
      %29 = vector.load %arg6[%c0_18, %c0_19] : memref<256x256xf32, #tpu.memory_space<vmem>>, vector<256x256xf32>
      tpu.vector_store %arg6[%c0_18, %c0_19], %28 {strides = array<i32>} : memref<256x256xf32, #tpu.memory_space<vmem>>, vector<256x256xf32>,
      %30 = arith.truncf %28 : vector<256x256xf32> to vector<256x256xbf16>
      %c0_20 = arith.constant 0 : index
      %c0_21 = arith.constant 0 : index
      %31 = vector.load %arg9[%c0_20, %c0_21] : memref<256x256xbf16, #tpu.memory_space<vmem>>, vector<256x256xbf16>
      tpu.vector_store %arg9[%c0_20, %c0_21], %30 {strides = array<i32>} : memref<256x256xbf16, #tpu.memory_space<vmem>>, vector<256x256xbf16>,
    } else {
    }
    %c0 = arith.constant 0 : index
    %c0_1 = arith.constant 0 : index
    %3 = vector.load %arg9[%c0, %c0_1] : memref<256x256xbf16, #tpu.memory_space<vmem>>, vector<256x256xbf16>
    %c0_2 = arith.constant 0 : index
    %c0_3 = arith.constant 0 : index
    %4 = vector.load %arg5[%c0_2, %c0_3] : memref<256x512xbf16, #tpu.memory_space<vmem>>, vector<256x512xbf16>
    %cst = arith.constant dense<0.000000e+00> : vector<256x512xf32>
    %5 = tpu.matmul %3, %4, %cst {dimension_numbers = #tpu.dot_dimension_numbers<[1], [0], [0], [1], [0, 0, 1, 1], [], []>} : vector<256x256xbf16>, vector<256x512xbf16>, vector<256x512xf32> -> vector<256x512xf32>
    %6 = arith.truncf %5 : vector<256x512xf32> to vector<256x512xbf16>
    %c0_4 = arith.constant 0 : index
    %c0_5 = arith.constant 0 : index
    %7 = vector.load %arg7[%c0_4, %c0_5] : memref<256x512xbf16, #tpu.memory_space<vmem>>, vector<256x512xbf16>
    tpu.vector_store %arg7[%c0_4, %c0_5], %6 {strides = array<i32>} : memref<256x512xbf16, #tpu.memory_space<vmem>>, vector<256x512xbf16>,
    return
  }
  func.func @transform_1(%arg0: i32, %arg1: i32, %arg2: i32, %arg3: memref<1536xi32, #tpu.memory_space<smem>>) -> (i32, i32) {
    %c0_i32 = arith.constant 0 : i32
    %c0_i32_0 = arith.constant 0 : i32
    return %c0_i32, %arg2 : i32, i32
  }
  func.func @transform_2(%arg0: i32, %arg1: i32, %arg2: i32, %arg3: memref<1536xi32, #tpu.memory_space<smem>>) -> (i32, i32) {
    %c3_i32 = arith.constant 3 : i32
    %0 = arith.muli %arg0, %c3_i32 : i32
    %1 = arith.addi %0, %arg1 : i32
    %c0_i32 = arith.constant 0 : i32
    %c0_i32_0 = arith.constant 0 : i32
    return %1, %c0_i32 : i32, i32
  }
  func.func @transform_3(%arg0: i32, %arg1: i32, %arg2: i32, %arg3: memref<1536xi32, #tpu.memory_space<smem>>) -> (i32, i32) {
    %c3_i32 = arith.constant 3 : i32
    %0 = arith.muli %arg0, %c3_i32 : i32
    %1 = arith.addi %0, %arg1 : i32
    %c0_i32 = arith.constant 0 : i32
    return %1, %arg2 : i32, i32
  }
}

</mosaic_0001>

<bundles_post_ra>
// kernel: tpu_custom_call.1
= control target key start
LH: loop header
LB: loop body
LE: loop exit
PB: predicated region body
PF: predicated region fallthrough
CT: control target
= control target key end

     0   :  { %s3259_s15 = smov [#allocation6]   ;;  %s3974_s0 = inlined_call_operand.hbm [shape: s32[1536], index: 0, kind: input, shape index: {}]   ;;  %s3975_s1 = inlined_call_operand.hbm [shape: f32[2056,256], index: 1, kind: input, shape index: {}]   ;;  %s3976_s2 = inlined_call_operand.hbm [shape: bf16[256,2048], index: 2, kind: input, shape index: {}]   ;;  %s3977_s3 = inlined_call_operand.hbm [shape: f32[1536,256], index: 3, kind: output, shape index: {0}]   ;;  %s3978_s4 = inlined_call_operand.hbm [shape: bf16[1536,2048], index: 4, kind: output, shape index: {1}]  }
   0x1   :  { %4004 = sst [smem:[#allocation43_spill]] %s3976_s2 }
   0x2   :  { %4005 = sst [smem:[#allocation44_spill]] %s3978_s4 }
   0x3   :  { %11 = dma.hbm_to_smem %s3974_s0, 192, %s3259_s15, [#allocation5] }
   0x4   :  { %3167 = dma.done.wait [#allocation5], 192 }
   0x5   :  { %3168 = vsyncadd [#allocation5], 4294967104 }
   0x6   :  { %13 = sfence }
   0x7   :  { %14 = vsyncpa [#allocation8], 0 }
   0x8   :  { %16 = vsyncpa [#allocation8 + $0x1], 0 }
   0x9   :  { %17 = vsyncpa [#allocation9], 0 }
   0xa   :  { %19 = vsyncpa [#allocation9 + $0x1], 0 }
   0xb   :  { %20 = vsyncpa [#allocation12], 0 }
   0xc   :  { %22 = vsyncpa [#allocation12 + $0x1], 0  ;;  %s3303_s18 = smov 0   ;;  %s3305_s19 = smov 0  }
   0xd   :  { %s3307_s20 = smov 0   ;;  %s3309_s21 = smov 0  }
   0xe   :  { %s3311_s22 = smov 0   ;;  %s3313_s0 = smov 0  }
   0xf   :  { %s3315_s23 = smov 0   ;;  %s3317_s24 = smov 0  }
  0x10   :  { %s3319_s25 = smov 0   ;;  %s3321_s26 = smov 0  }
  0x11   :  { %s3323_s27 = smov 0   ;;  %s3325_s28 = smov 0  }
  0x12   :  { %s3327_s29 = smov 0   ;;  %s3329_s30 = smov 0  }
  0x13   :  { %s3331_s5 = smov 0   ;;  %s3333_s6 = smov 0  }
  0x14 LB: > { %4006 = sst [smem:[#allocation20_spill]] %s3185_s18  ;;  %s2303_s7 = sadd.s32 4294967295, %s3245_s6   ;;  %s3245_s6 = sphi %s3333_s6, %s28_s6   ;;  %s3241_s5 = sphi %s3331_s5, %s4072_s5   ;;  %s3237_s30 = sphi %s3329_s30, %s4076_s30   ;;  %s3233_s29 = sphi %s3327_s29, %s4070_s29   ;;  %s3229_s28 = sphi %s3325_s28, %s4069_s28   ;;  %s3225_s27 = sphi %s3323_s27, %s4068_s27   ;;  %s3221_s26 = sphi %s3321_s26, %s4067_s26   ;;  %s3217_s25 = sphi %s3319_s25, %s4066_s25   ;;  %s3213_s24 = sphi %s3317_s24, %s4065_s24   ;;  %s3209_s23 = sphi %s3315_s23, %s4064_s23   ;;  %s3205_s0 = sphi %s3313_s0, %s4063_s0   ;;  %s3201_s22 = sphi %s3311_s22, %s4075_s22   ;;  %s3197_s21 = sphi %s3309_s21, %s4074_s21   ;;  %s3193_s20 = sphi %s3307_s20, %s4061_s20   ;;  %s3189_s19 = sphi %s3305_s19, %s4060_s19   ;;  %s3185_s18 = sphi %s3303_s18, %s4059_s18  }
  0x15   : > { %4007 = sst [smem:[#allocation21_spill]] %s3189_s19  ;;  %s40_s9 = sadd.s32 1, %s3233_s29 }
  0x16   : > { %4008 = sst [smem:[#allocation22_spill]] %s3193_s20  ;;  %s43_s10 = sadd.s32 1, %s3237_s30 }
  0x17   : > { %4009 = sst [smem:[#allocation23_spill]] %s3197_s21  ;;  %p41_p0 = scmp.ge.s32.totalorder %s40_s9, 4 }
  0x18   : > { %4010 = sst [smem:[#allocation24_spill]] %s3205_s0  ;;  %s47_s11 = sadd.s32 1, %s3241_s5 }
  0x19   : > { %4011 = sst [smem:[#allocation25_spill]] %s3213_s24  ;;  %s54_s12 = sadd.s32 1, %s3217_s25 }
  0x1a   : > { %4012 = sst [smem:[#allocation26_spill]] %s3217_s25  ;;  %p61_p1 = scmp.ne.s32.totalorder %s3217_s25, %s3213_s24 }
  0x1b   : > { %4013 = sst [smem:[#allocation27_spill]] %s3221_s26  ;;  %s4078_s9 = smov (%p41_p0, %s40_s9), 0 }
  0x1c   : > { %4014 = sst [smem:[#allocation28_spill]] %s3233_s29  ;;  %s4080_s10 = smov (!%p41_p0, %s43_s10), %s3237_s30 }
  0x1d   : > { %4015 = sst [smem:[#allocation29_spill]] %s3237_s30  ;;  %s3396_s13 = ssub.s32 %s3233_s29, %s4078_s9 }
  0x1e   : > { %4016 = sst [smem:[#allocation30_spill]] %s3241_s5  ;;  %p62_p2 = scmp.eq.s32.totalorder %s3245_s6, 0 }
  0x1f   : > { %4017 = sst [smem:[#allocation31_spill]] %s3245_s6  ;;  %p45_p3 = scmp.ge.s32.totalorder %s4080_s10, 3 }
  0x20   : > { %4018 = sst [smem:[#allocation32_spill]] %s4078_s9  ;;  %p52_p4 = scmp.eq.s32.totalorder %s3396_s13, 0 }
  0x21   : > { %p3400_p5 = por %p62_p2, %p61_p1  ;;  %p67_p6 = scmp.ne.s32.totalorder %s3213_s24, %s3209_s23 }
  0x22   : > { %s4082_s10 = smov (%p45_p3, %s4080_s10), 0  ;;  %s4084_s11 = smov (!%p45_p3, %s47_s11), %s3241_s5 }
  0x23   : > { %4020 = sst [smem:[#allocation33_spill]] %s4082_s10  ;;  %p49_p7 = scmp.ge.s32.totalorder %s4084_s11, 2 }
  0x24   : > { %s3410_s15 = scalar_select %p52_p4, %s3217_s25, %s54_s12  }
  0x25   : > { %p68_p8 = scmp.eq.s32.totalorder %s2303_s7, 0  ;;  %s77_s16 = smul.u32 3, %s3241_s5 }
  0x26   : > { %4021 = sst [smem:[#allocation34_spill]] %s3410_s15  ;;  %s84_s17 = sadd.s32 1, %s3205_s0 }
  0x27   : > { %s4086_s11 = smov (%p49_p7, %s4084_s11), 0  ;;  %p3416_p9 = por %p68_p8, %p67_p6 }
  0x28   : > { %4022 = sst [smem:[#allocation35_spill]] %s4086_s11  ;;  %s78_s23 = sadd.s32 %s3237_s30, %s77_s16 }
  0x29   : > { %s79_s12 = smul.u32 3, %s4086_s11  ;;  %p94_p10 = scmp.ne.s32.totalorder %s3205_s0, %s3201_s22 }
  0x2a   : > { %p3424_p11 = scmp.eq.s32.totalorder %s2303_s7, 23  ;;  %p100_p12 = scmp.ne.s32.totalorder %s3201_s22, %s3197_s21 }
  0x2b   : > { %s80_s5 = sadd.s32 %s79_s12, %s4082_s10  ;;  %s4025_s15 = sadd.s32 4294967294, %s3245_s6  }
  0x2c   : > { %p3433_p13 = scmp.eq.s32.totalorder %s4025_s15, 23  ;;  %s81_s16 = ssub.s32 %s78_s23, %s80_s5 }
  0x2d   : > { %p3439_p0 = por %p3424_p11, %p94_p10  ;;  %p82_p1 = scmp.eq.s32.totalorder %s81_s16, 0 }
  0x2e   : > { %p3445_p2 = por %p3433_p13, %p100_p12  ;;  %s113_s12 = sor.u32 %s81_s16, %s3396_s13 }
  0x2f   : > { %s116_s15 = sadd.s32 1, %s3193_s20  ;;  %p114_p3 = scmp.eq.s32.totalorder %s113_s12, 0 }
  0x30   : > { %s4028_s11 = scalar_select %p3445_p2, 1, 0 }
  0x31   : > { %s3452_s10 = scalar_select %p82_p1, %s3205_s0, %s84_s17  }
  0x32   : > { %4029 = sst [smem:[#allocation36_spill]] %s4028_s11  ;;  %p126_p4 = scmp.ne.s32.totalorder %s3193_s20, %s3189_s19 }
  0x33   : > { %4030 = sst [smem:[#allocation37_spill]] %s3452_s10  ;;  %p132_p6 = scmp.ne.s32.totalorder %s3189_s19, %s3185_s18 }
  0x34   : > { %s3459_s5 = scalar_select %p114_p3, %s3193_s20, %s116_s15  }
  0x35   : > { %p3463_p7 = por %p126_p4, %p3424_p11  ;;  %p3469_p8 = por %p132_p6, %p3433_p13 }
  0x36   : > { %4031 = sst [smem:[#allocation38_spill]] %s3459_s5  ;;  %p2656_p10 = scmp.lt.s32.totalorder %s3245_s6, 24 }
  0x37   : > { %s4032_s23 = scalar_select %p3463_p7, 1, 0 }
  0x38   : > { %s4034_s30 = scalar_select %p3469_p8, 1, 0 }
  0x39   : > { %4033 = sst [smem:[#allocation39_spill]] %s4032_s23  ;;  %s153_s13 = sand.u32 1, %s3217_s25  }
  0x3a   : > { %4035 = sst [smem:[#allocation40_spill]] %s4034_s30  ;;  %s2307_s16 = sshll.u32 %s153_s13, 9 }
  0x3b   : > { %s2538_s17 = sshll.u32 %s3233_s29, 8  ;;  %s4036_s2 = sld [smem:[#allocation43_spill]] }
  0x3c   : > { %s157_s15 = scalar_lea.vmem [#allocation7], %s2307_s16  ;;  %p3481_p11 = pnand %p2656_p10, %p3400_p5 }
  0x3d   : > { %s164_s5 = sshll.u32 %s157_s15, 4  ;;  %s154_s4 = scalar_lea.sflag [#allocation8], %s153_s13  ;;  %s165_s5 = int_to_ptr.vmem [resolvable:$true] %s164_s5 }
  0x3e   : > { %p2969_p12 = pneg %p3481_p11  ;;  %s2980_s20 = scalar_lea.vmem %s165_s5, 8192 }
  0x3f   : > { %p2981_p13 = scmp.ne.s32.totalorder %s165_s5, %s2980_s20  ;;  %s3260_s29 = smov [#allocation7]  }
  0x40   : > { %s2985_s25 = sshll.u32 %s3260_s29, 4  ;;  %s2986_s25 = int_to_ptr.vmem [resolvable:$false] %s2985_s25 }
  0x41   : > { %s163_s0 = scalar_lea.hbm %s4036_s2, %s2538_s17  ;;  %p2983_p1 = pnand %p2981_p13, %p2969_p12 }
  0x42   : > { %s2987_s10 = scalar_lea.vmem %s2986_s25, 16384  ;;  %p2988_p4 = scmp.lt.s32.totalorder %s165_s5, %s2986_s25 }
  0x43   : > { %p2984_p3 = pneg %p2983_p1  ;;  %p2989_p6 = scmp.lt.s32.totalorder %s2987_s10, %s2980_s20 }
  0x45   : > { %p2990_p8 = por %p2989_p6, %p2988_p4 }
  0x47   : > { %p2991_p2 = pnand %p2990_p8, %p2984_p3 }
  0x49   : > { %2994 = shalt.err (!%p2991_p2)
}
  0x4a   : > { %s3261_s14 = smov 1024   ;;  %s3262_s13 = smov 256  }
  0x4b   : > { %s3263_s16 = smov 16   ;;  %p2310_p5 = scmp.ge.s32.totalorder %s3245_s6, 1 }
  0x4c   : > { %2648 = dma.hbm_to_vmem [thread:$0]  (!%p3481_p11), %s163_s0, 8192, %s165_s5, %s154_s4, %s3261_s14, %s3262_s13, %s3263_s16  }
  0x4d   : > { %p172_p10 = scmp.lt.s32.totalorder %s3245_s6, 25 }
  0x4f   : > { %p173_p12 = pnand %p2310_p5, %p172_p10 }
  0x51   : > { %176 = sbr.rel (%p173_p12) target bundleno = 675 (0x2a3), region = 24 }
  0x56   : > { %s178_s29 = sand.u32 1, %s3213_s24  }
  0x57   : > { %s2311_s25 = sshll.u32 %s178_s29, 9  ;;  %s179_s20 = scalar_lea.sflag [#allocation8], %s178_s29 }
  0x58   : > { %s3492_s17 = scalar_lea.vmem [#allocation7], %s2311_s25 }
  0x59   : > { %3170 = dma.done.wait (%p3416_p9), %s179_s20, 8192  }
  0x5a   : > { %3172 = vsyncadd (%p3416_p9), %s179_s20, 4294959104  ;;  %s3990_s0 = sand.u32 1, %s3201_s22   ;;  %s3989_s5 = sand.u32 1, %s3189_s19  }
  0x5b   : > { %s2312_s12 = sshll.u32 %s3990_s0, 9  ;;  %s2313_s15 = sshll.u32 %s3989_s5, 9 }
  0x5c   : > { %s3504_s9 = scalar_lea.vmem [#allocation10], %s2312_s12  ;;  %s3506_s4 = scalar_lea.vmem [#allocation11], %s2313_s15 }
  0x5d   : > { %4038 = sst [smem:[#allocation41_spill]] %s3506_s4  ;;  %p2314_p2 = scmp.ne.s32.totalorder %s3221_s26, 0 }
  0x5f   : > { %219 = sbr.rel (%p2314_p2) target bundleno = 265 (0x109), region = 32 }
  0x64   : > { %p220_p9 = scmp.lt.s32.totalorder %s3225_s27, 0  ;;  %s221_s8 = ssub.s32 0, %s3225_s27 }
  0x65   : > { %s2315_s10 = smin.u32 %s3225_s27, %s221_s8  ;;  %p2318_p11 = scmp.ne.s32.totalorder %s3225_s27, 0 }
  0x66   : > { %s223_s14 = sand.u32 1, %s2315_s10   ;;  %s3516_s25 = smov (!%p2318_p11), 0  }
  0x67   : > { %s224_s13 = ssub.s32 0, %s223_s14  ;;  %235 = sbr.rel (%p2318_p11) target bundleno = 150 (0x96), region = 36 }
  0x68   : > { %s4088_s13 = smov (!%p220_p9, %s224_s13), %s223_s14 }
  0x69   : > { %p2317_p8 = scmp.lt.s32.totalorder %s4088_s13, 0  ;;  %s230_s16 = sadd.s32 2, %s4088_s13 }
  0x6b   : > { %s4090_s16 = smov (!%p2317_p8, %s230_s16), %s4088_s13 }
  0x6c LB: >> { %s4039_s29 = smul.u32 768, %s3229_s28  ;;  %s251_s12 = sshrl.u32 %s3249_s25, 3  ;;  %s3249_s25 = sphi %s3516_s25, %s242_s25  }
  0x6d   : >> { %s252_s8 = sand.u32 7, %s3249_s25   ;;  %s2321_s10 = sshll.u32 %s251_s12, 4 }
  0x6e   : >> { %s243_s20 = sadd.s32 %s3249_s25, %s4039_s29  ;;  %s254_s14 = sadd.s32 %s2321_s10, %s252_s8 }
  0x6f   : >> { %s244_s15 = sld [smem:[#allocation6 + %s243_s20]]  ;;  %s255_s13 = scalar_lea.vmem [#allocation2], %s254_s14 }
  0x70   : >> { %s257_s5 = sshll.u32 %s255_s13, 4  ;;  %s2997_s20 = scalar_lea.hbm %s3975_s1, 65792  ;;  %s258_s5 = int_to_ptr.vmem [resolvable:$true] %s257_s5 }
  0x75   : >> { %s245_s0 = sshrl.u32 %s244_s15, 3  ;;  %s246_s2 = sand.u32 7, %s244_s15  }
  0x76   : >> { %s2319_s24 = sshll.u32 %s245_s0, 4 }
  0x77   : >> { %s248_s30 = sadd.s32 %s2319_s24, %s246_s2 }
  0x78   : >> { %s2320_s18 = sshll.u32 %s248_s30, 4 }
  0x79   : >> { %s250_s6 = scalar_lea.hbm %s3975_s1, %s2320_s18 }
  0x7a   : >> { %s2995_s23 = scalar_lea.hbm %s250_s6, 32  ;;  %p2998_p1 = scmp.lt.s32.totalorder %s250_s6, %s3975_s1 }
  0x7b   : >> { %p2996_p13 = scmp.ne.s32.totalorder %s250_s6, %s2995_s23  ;;  %p2999_p3 = scmp.lt.s32.totalorder %s2997_s20, %s2995_s23 }
  0x7d   : >> { %p3000_p4 = por %p2999_p3, %p2998_p1 }
  0x7f   : >> { %p3001_p6 = pnand %p3000_p4, %p2996_p13 }
  0x81   : >> { %3004 = shalt.err (!%p3001_p6)  }
  0x82   : >> { %s3005_s2 = scalar_lea.vmem %s258_s5, 32  ;;  %s3264_s24 = smov [#allocation2]  }
  0x83   : >> { %p3006_p5 = scmp.ne.s32.totalorder %s258_s5, %s3005_s2  ;;  %s3007_s30 = sshll.u32 %s3264_s24, 4  ;;  %s3008_s30 = int_to_ptr.vmem [resolvable:$false] %s3007_s30 }
  0x84   : >> { %s3009_s18 = scalar_lea.vmem %s3008_s30, 16384  ;;  %p3010_p10 = scmp.lt.s32.totalorder %s258_s5, %s3008_s30 }
  0x85   : >> { %p3011_p12 = scmp.lt.s32.totalorder %s3009_s18, %s3005_s2 }
  0x87   : >> { %p3012_p2 = por %p3011_p12, %p3010_p10 }
  0x89   : >> { %p3013_p9 = pnand %p3012_p2, %p3006_p5 }
  0x8b   : >> { %3016 = shalt.err (!%p3013_p9)  }
  0x8c   : >> { %s3265_s19 = smov 128   ;;  %s3266_s21 = smov 1  }
  0x8d   : >> { %260 = dma.hbm_to_vmem [thread:$0]  %s250_s6, 32, %s258_s5, [#allocation4], %s3265_s19, %s3265_s19, %s3266_s21 }
  0x8e   : >> { %s242_s25 = sadd.s32 1, %s3249_s25  }
  0x8f   : >> { %p239_p8 = scmp.ge.s32.totalorder %s242_s25, 256  }
  0x91   : > { %241 = sbr.rel (!%p239_p8) target bundleno = 108 (0x6c), region = 127 }
  0x96 PF: > { %s261_s11 = sadd.s32 1, %s3225_s27 }
  0x97   : > { %p2322_p11 = scmp.ge.s32.totalorder %s261_s11, 3 }
  0x98   : > { %p266_p13 = scmp.lt.s32.totalorder (!%p2322_p11), %s261_s11, 0  ;;  %s267_s23 = ssub.s32 (!%p2322_p11), 0, %s261_s11 }
  0x99   : > { %265 = sbr.rel (%p2322_p11) target bundleno = 209 (0xd1), region = 47  ;;  %s2323_s0 = smin.u32 (!%p2322_p11), %s267_s23, %s261_s11 }
  0x9a   : > { %s278_s29 = smul.u32 (!%p2322_p11), 3, %s3229_s28  ;;  %s269_s15 = sand.u32 (!%p2322_p11), 1, %s2323_s0  }
  0x9b   : > { %s270_s10 = ssub.s32 (!%p2322_p11), 0, %s269_s15  ;;  %s3545_s25 = smov (!%p2322_p11), 0  }
  0x9c   : > { %s3540_s14 = sadd.s32 (!%p2322_p11), %s278_s29, %s261_s11 }
  0x9d   : > { %4040 = sst [smem:[#allocation42_spill]] (!%p2322_p11), %s3540_s14 }
  0x9e   : > { %s4092_s10 = smov (!%p266_p13, %s270_s10), %s269_s15 }
  0x9f   : > { %p2325_p1 = scmp.lt.s32.totalorder %s4092_s10, 0  ;;  %s276_s5 = sadd.s32 2, %s4092_s10 }
  0xa1   : > { %s4094_s5 = smov (!%p2325_p1, %s276_s5), %s4092_s10 }
  0xa2 LB: >> { %s4041_s14 = sld [smem:[#allocation42_spill]]  ;;  %s2330_s13 = sshll.u32 %s4094_s5, 9  ;;  %s3253_s25 = sphi %s3545_s25, %s286_s25  }
  0xa3   : >> { %s295_s12 = sshrl.u32 %s3253_s25, 3  ;;  %s296_s2 = sand.u32 7, %s3253_s25  }
  0xa4   : >> { %s2329_s24 = sshll.u32 %s295_s12, 4 }
  0xa5   : >> { %s298_s30 = sadd.s32 %s2329_s24, %s296_s2 }
  0xa6   : >> { %s300_s18 = sadd.s32 %s2330_s13, %s298_s30  ;;  %s3019_s13 = scalar_lea.hbm %s3975_s1, 65792 }
  0xa7   : >> { %s301_s19 = scalar_lea.vmem [#allocation2], %s300_s18 }
  0xa8   : >> { %s4042_s6 = sshll.u32 %s4041_s14, 8  ;;  %s304_s21 = sshll.u32 %s301_s19, 4  ;;  %s3556_s21 = int_to_ptr.vmem [resolvable:$true] %s304_s21 }
  0xa9   : >> { %s287_s20 = sadd.s32 %s3253_s25, %s4042_s6  ;;  %s302_s14 = scalar_lea.sflag [#allocation4], %s4094_s5 }
  0xaa   : >> { %s288_s8 = sld [smem:[#allocation6 + %s287_s20]] }
  0xb0   : >> { %s289_s11 = sshrl.u32 %s288_s8, 3  ;;  %s290_s23 = sand.u32 7, %s288_s8  }
  0xb1   : >> { %s2327_s0 = sshll.u32 %s289_s11, 4 }
  0xb2   : >> { %s292_s29 = sadd.s32 %s2327_s0, %s290_s23 }
  0xb3   : >> { %s2328_s15 = sshll.u32 %s292_s29, 4 }
  0xb4   : >> { %s294_s6 = scalar_lea.hbm %s3975_s1, %s2328_s15 }
  0xb5   : >> { %s3017_s4 = scalar_lea.hbm %s294_s6, 32  ;;  %p3020_p4 = scmp.lt.s32.totalorder %s294_s6, %s3975_s1 }
  0xb6   : >> { %p3018_p3 = scmp.ne.s32.totalorder %s294_s6, %s3017_s4  ;;  %p3021_p6 = scmp.lt.s32.totalorder %s3019_s13, %s3017_s4 }
  0xb8   : >> { %p3022_p5 = por %p3021_p6, %p3020_p4 }
  0xba   : >> { %p3023_p10 = pnand %p3022_p5, %p3018_p3 }
  0xbc   : >> { %3026 = shalt.err (!%p3023_p10)  }
  0xbd   : >> { %s3027_s26 = scalar_lea.vmem %s3556_s21, 32  ;;  %s3267_s8 = smov [#allocation2]  }
  0xbe   : >> { %p3028_p12 = scmp.ne.s32.totalorder %s3556_s21, %s3027_s26  ;;  %s3029_s30 = sshll.u32 %s3267_s8, 4  ;;  %s3030_s30 = int_to_ptr.vmem [resolvable:$false] %s3029_s30 }
  0xbf   : >> { %s3031_s18 = scalar_lea.vmem %s3030_s30, 16384  ;;  %p3032_p2 = scmp.lt.s32.totalorder %s3556_s21, %s3030_s30 }
  0xc0   : >> { %p3033_p9 = scmp.lt.s32.totalorder %s3031_s18, %s3027_s26 }
  0xc2   : >> { %p3034_p8 = por %p3033_p9, %p3032_p2 }
  0xc4   : >> { %p3035_p11 = pnand %p3034_p8, %p3028_p12 }
  0xc6   : >> { %3038 = shalt.err (!%p3035_p11)  }
  0xc7   : >> { %s3268_s19 = smov 128   ;;  %s3269_s4 = smov 1  }
  0xc8   : >> { %307 = dma.hbm_to_vmem [thread:$0]  %s294_s6, 32, %s3556_s21, %s302_s14, %s3268_s19, %s3268_s19, %s3269_s4 }
  0xc9   : >> { %s286_s25 = sadd.s32 1, %s3253_s25  }
  0xca   : >> { %p283_p13 = scmp.ge.s32.totalorder %s286_s25, 256  }
  0xcc   : > { %285 = sbr.rel (!%p283_p13) target bundleno = 162 (0xa2), region = 138 }
  0xd1 PF: > { %s3255_s11 = smov 0  }
  0xd2 LB: >> { %s314_s23 = scalar_lea.sflag [#allocation4], %s4090_s16  ;;  %s3257_s11 = sphi %s3255_s11, %s313_s11  }
  0xd3   : >> { %3173 = dma.done.wait %s314_s23, 32 }
  0xd4   : >> { %3174 = vsyncadd %s314_s23, 4294967264  ;;  %s313_s11 = sadd.s32 1, %s3257_s11  }
  0xd5   : >> { %p310_p1 = scmp.ge.s32.totalorder %s313_s11, 256  }
  0xd6   : > { %s2539_s14 = sshll.u32 (%p310_p1), %s4090_s16, 9 }
  0xd7   : > { %312 = sbr.rel (!%p310_p1) target bundleno = 210 (0xd2), region = 149  ;;  %s3577_s6 = scalar_lea.vmem (%p310_p1), [#allocation2], %s2539_s14 }
  0xd8   : > { %v321_v0 = vld [vmem:[%s3577_s6] sm:$0xff] (%p310_p1)  ;;  %v322_v1 = vld [vmem:[%s3577_s6 + $0x8] sm:$0xff] (%p310_p1)  ;;  %v323_v2 = vld [vmem:[%s3577_s6 + $0x10] sm:$0xff] (%p310_p1) }
  0xd9   : > { %385 = vst [vmem:[%s3504_s9] sm:$0xff] (%p310_p1), %v321_v0  ;;  %386 = vst [vmem:[%s3504_s9 + $0x8] sm:$0xff] (%p310_p1), %v322_v1  ;;  %v324_v3 = vld [vmem:[%s3577_s6 + $0x18] sm:$0xff] (%p310_p1)  ;;  %v325_v4 = vld [vmem:[%s3577_s6 + $0x20] sm:$0xff] (%p310_p1)  ;;  %v2540_v6 = vpack.c.bf16 (%p310_p1), %v322_v1, %v321_v0 }
  0xda   : > { %387 = vst [vmem:[%s3504_s9 + $0x10] sm:$0xff] (%p310_p1), %v323_v2  ;;  %v326_v5 = vld [vmem:[%s3577_s6 + $0x28] sm:$0xff] (%p310_p1)  ;;  %388 = vst [vmem:[%s3504_s9 + $0x18] sm:$0xff] (%p310_p1), %v324_v3  ;;  %v327_v7 = vld [vmem:[%s3577_s6 + $0x30] sm:$0xff] (%p310_p1)  ;;  %v2541_v10 = vpack.c.bf16 (%p310_p1), %v324_v3, %v323_v2 }
  0xdb   : > { %389 = vst [vmem:[%s3504_s9 + $0x20] sm:$0xff] (%p310_p1), %v325_v4  ;;  %390 = vst [vmem:[%s3504_s9 + $0x28] sm:$0xff] (%p310_p1), %v326_v5  ;;  %v328_v8 = vld [vmem:[%s3577_s6 + $0x38] sm:$0xff] (%p310_p1)  ;;  %v329_v9 = vld [vmem:[%s3577_s6 + $0x40] sm:$0xff] (%p310_p1)  ;;  %v2542_v11 = vpack.c.bf16 (%p310_p1), %v326_v5, %v325_v4 }
  0xdc   : > { %391 = vst [vmem:[%s3504_s9 + $0x30] sm:$0xff] %v327_v7  ;;  %392 = vst [vmem:[%s3504_s9 + $0x38] sm:$0xff] %v328_v8  ;;  %v330_v12 = vld [vmem:[%s3577_s6 + $0x48] sm:$0xff]  ;;  %v331_v13 = vld [vmem:[%s3577_s6 + $0x50] sm:$0xff]  ;;  %v2543_v15 = vpack.c.bf16 %v328_v8, %v327_v7 }
  0xdd   : > { %393 = vst [vmem:[%s3504_s9 + $0x40] sm:$0xff] %v329_v9  ;;  %v332_v14 = vld [vmem:[%s3577_s6 + $0x58] sm:$0xff]  ;;  %641 = vst [vmem:[#allocation3 + $0xb0] sm:$0xff] %v2540_v6  ;;  %v333_v16 = vld [vmem:[%s3577_s6 + $0x60] sm:$0xff]  ;;  %v2544_v19 = vpack.c.bf16 %v330_v12, %v329_v9 }
  0xde   : > { %394 = vst [vmem:[%s3504_s9 + $0x48] sm:$0xff] %v330_v12  ;;  %395 = vst [vmem:[%s3504_s9 + $0x50] sm:$0xff] %v331_v13  ;;  %v334_v17 = vld [vmem:[%s3577_s6 + $0x68] sm:$0xff]  ;;  %v335_v18 = vld [vmem:[%s3577_s6 + $0x70] sm:$0xff]  ;;  %v2545_v20 = vpack.c.bf16 %v332_v14, %v331_v13 }
  0xdf   : > { %396 = vst [vmem:[%s3504_s9 + $0x58] sm:$0xff] %v332_v14  ;;  %642 = vst [vmem:[#allocation3] sm:$0xff] %v2541_v10  ;;  %v336_v21 = vld [vmem:[%s3577_s6 + $0x78] sm:$0xff]  ;;  %v337_v22 = vld [vmem:[%s3577_s6 + $0x80] sm:$0xff]  ;;  %v2546_v24 = vpack.c.bf16 %v334_v17, %v333_v16 }
  0xe0   : > { %643 = vst [vmem:[#allocation3 + $0xd8] sm:$0xff] %v2542_v11  ;;  %397 = vst [vmem:[%s3504_s9 + $0x60] sm:$0xff] %v333_v16  ;;  %v338_v23 = vld [vmem:[%s3577_s6 + $0x88] sm:$0xff]  ;;  %v339_v25 = vld [vmem:[%s3577_s6 + $0x90] sm:$0xff]  ;;  %v2547_v28 = vpack.c.bf16 %v336_v21, %v335_v18 }
  0xe1   : > { %398 = vst [vmem:[%s3504_s9 + $0x68] sm:$0xff] %v334_v17  ;;  %399 = vst [vmem:[%s3504_s9 + $0x70] sm:$0xff] %v335_v18  ;;  %v340_v26 = vld [vmem:[%s3577_s6 + $0x98] sm:$0xff]  ;;  %v341_v27 = vld [vmem:[%s3577_s6 + $0xa0] sm:$0xff]  ;;  %v2548_v29 = vpack.c.bf16 %v338_v23, %v337_v22 }
  0xe2   : > { %644 = vst [vmem:[#allocation3 + $0x18] sm:$0xff] %v2543_v15  ;;  %400 = vst [vmem:[%s3504_s9 + $0x78] sm:$0xff] %v336_v21  ;;  %v342_v30 = vld [vmem:[%s3577_s6 + $0xa8] sm:$0xff]  ;;  %v343_v31 = vld [vmem:[%s3577_s6 + $0xb0] sm:$0xff]  ;;  %v2549_v33 = vpack.c.bf16 %v340_v26, %v339_v25 }
  0xe3   : > { %401 = vst [vmem:[%s3504_s9 + $0x80] sm:$0xff] %v337_v22  ;;  %402 = vst [vmem:[%s3504_s9 + $0x88] sm:$0xff] %v338_v23  ;;  %v344_v32 = vld [vmem:[%s3577_s6 + $0xb8] sm:$0xff]  ;;  %v345_v34 = vld [vmem:[%s3577_s6 + $0xc0] sm:$0xff]  ;;  %v2550_v37 = vpack.c.bf16 %v342_v30, %v341_v27 }
  0xe4   : > { %645 = vst [vmem:[#allocation3 + $0x50] sm:$0xff] %v2544_v19  ;;  %646 = vst [vmem:[#allocation3 + $0x68] sm:$0xff] %v2545_v20  ;;  %v346_v35 = vld [vmem:[%s3577_s6 + $0xc8] sm:$0xff]  ;;  %v347_v36 = vld [vmem:[%s3577_s6 + $0xd0] sm:$0xff]  ;;  %v2551_v38 = vpack.c.bf16 %v344_v32, %v343_v31 }
  0xe5   : > { %403 = vst [vmem:[%s3504_s9 + $0x90] sm:$0xff] %v339_v25  ;;  %404 = vst [vmem:[%s3504_s9 + $0x98] sm:$0xff] %v340_v26  ;;  %v348_v39 = vld [vmem:[%s3577_s6 + $0xd8] sm:$0xff]  ;;  %v349_v40 = vld [vmem:[%s3577_s6 + $0xe0] sm:$0xff]  ;;  %v2552_v42 = vpack.c.bf16 %v346_v35, %v345_v34 }
  0xe6   : > { %405 = vst [vmem:[%s3504_s9 + $0xa0] sm:$0xff] %v341_v27  ;;  %647 = vst [vmem:[#allocation3 + $0x30] sm:$0xff] %v2546_v24  ;;  %v350_v41 = vld [vmem:[%s3577_s6 + $0xe8] sm:$0xff]  ;;  %v351_v43 = vld [vmem:[%s3577_s6 + $0xf0] sm:$0xff]  ;;  %v2553_v46 = vpack.c.bf16 %v348_v39, %v347_v36 }
  0xe7   : > { %406 = vst [vmem:[%s3504_s9 + $0xa8] sm:$0xff] %v342_v30  ;;  %407 = vst [vmem:[%s3504_s9 + $0xb0] sm:$0xff] %v343_v31  ;;  %v352_v44 = vld [vmem:[%s3577_s6 + $0xf8] sm:$0xff]  ;;  %v353_v45 = vld [vmem:[%s3577_s6 + $0x100] sm:$0xff]  ;;  %v2554_v47 = vpack.c.bf16 %v350_v41, %v349_v40 }
  0xe8   : > { %408 = vst [vmem:[%s3504_s9 + $0xb8] sm:$0xff] %v344_v32  ;;  %648 = vst [vmem:[#allocation3 + $0x48] sm:$0xff] %v2547_v28  ;;  %v354_v48 = vld [vmem:[%s3577_s6 + $0x108] sm:$0xff]  ;;  %v355_v49 = vld [vmem:[%s3577_s6 + $0x110] sm:$0xff]  ;;  %v2555_v51 = vpack.c.bf16 %v352_v44, %v351_v43 }
  0xe9   : > { %649 = vst [vmem:[#allocation3 + $0x80] sm:$0xff] %v2548_v29  ;;  %409 = vst [vmem:[%s3504_s9 + $0xc0] sm:$0xff] %v345_v34  ;;  %v356_v50 = vld [vmem:[%s3577_s6 + $0x118] sm:$0xff]  ;;  %v357_v52 = vld [vmem:[%s3577_s6 + $0x120] sm:$0xff]  ;;  %v2556_v55 = vpack.c.bf16 %v354_v48, %v353_v45 }
  0xea   : > { %410 = vst [vmem:[%s3504_s9 + $0xc8] sm:$0xff] %v346_v35  ;;  %411 = vst [vmem:[%s3504_s9 + $0xd0] sm:$0xff] %v347_v36  ;;  %v358_v53 = vld [vmem:[%s3577_s6 + $0x128] sm:$0xff]  ;;  %v359_v54 = vld [vmem:[%s3577_s6 + $0x130] sm:$0xff]  ;;  %v2557_v56 = vpack.c.bf16 %v356_v50, %v355_v49 }
  0xeb   : > { %650 = vst [vmem:[#allocation3 + $0x88] sm:$0xff] %v2549_v33  ;;  %412 = vst [vmem:[%s3504_s9 + $0xd8] sm:$0xff] %v348_v39  ;;  %v360_v57 = vld [vmem:[%s3577_s6 + $0x138] sm:$0xff]  ;;  %v361_v58 = vld [vmem:[%s3577_s6 + $0x140] sm:$0xff]  ;;  %v2558_v60 = vpack.c.bf16 %v358_v53, %v357_v52 }
  0xec   : > { %413 = vst [vmem:[%s3504_s9 + $0xe0] sm:$0xff] %v349_v40  ;;  %414 = vst [vmem:[%s3504_s9 + $0xe8] sm:$0xff] %v350_v41  ;;  %v362_v59 = vld [vmem:[%s3577_s6 + $0x148] sm:$0xff]  ;;  %v363_v61 = vld [vmem:[%s3577_s6 + $0x150] sm:$0xff]  ;;  %v2559_v0 = vpack.c.bf16 %v360_v57, %v359_v54 }
  0xed   : > { %651 = vst [vmem:[#allocation3 + $0xe8] sm:$0xff] %v2550_v37  ;;  %652 = vst [vmem:[#allocation3 + $0xb8] sm:$0xff] %v2551_v38  ;;  %v364_v62 = vld [vmem:[%s3577_s6 + $0x158] sm:$0xff]  ;;  %v365_v63 = vld [vmem:[%s3577_s6 + $0x160] sm:$0xff]  ;;  %v2560_v1 = vpack.c.bf16 %v362_v59, %v361_v58 }
  0xee   : > { %415 = vst [vmem:[%s3504_s9 + $0xf0] sm:$0xff] %v351_v43  ;;  %416 = vst [vmem:[%s3504_s9 + $0xf8] sm:$0xff] %v352_v44  ;;  %v366_v2 = vld [vmem:[%s3577_s6 + $0x168] sm:$0xff]  ;;  %v367_v3 = vld [vmem:[%s3577_s6 + $0x170] sm:$0xff]  ;;  %v2561_v5 = vpack.c.bf16 %v364_v62, %v363_v61 }
  0xef   : > { %417 = vst [vmem:[%s3504_s9 + $0x100] sm:$0xff] %v353_v45  ;;  %653 = vst [vmem:[#allocation3 + $0x60] sm:$0xff] %v2552_v42  ;;  %v368_v4 = vld [vmem:[%s3577_s6 + $0x178] sm:$0xff]  ;;  %v369_v6 = vld [vmem:[%s3577_s6 + $0x180] sm:$0xff]  ;;  %v2562_v9 = vpack.c.bf16 %v366_v2, %v365_v63 }
  0xf0   : > { %418 = vst [vmem:[%s3504_s9 + $0x108] sm:$0xff] %v354_v48  ;;  %419 = vst [vmem:[%s3504_s9 + $0x110] sm:$0xff] %v355_v49  ;;  %v370_v7 = vld [vmem:[%s3577_s6 + $0x188] sm:$0xff]  ;;  %v371_v8 = vld [vmem:[%s3577_s6 + $0x190] sm:$0xff]  ;;  %v2563_v10 = vpack.c.bf16 %v368_v4, %v367_v3 }
  0xf1   : > { %420 = vst [vmem:[%s3504_s9 + $0x118] sm:$0xff] %v356_v50  ;;  %654 = vst [vmem:[#allocation3 + $0xf0] sm:$0xff] %v2553_v46  ;;  %v372_v11 = vld [vmem:[%s3577_s6 + $0x198] sm:$0xff]  ;;  %v373_v12 = vld [vmem:[%s3577_s6 + $0x1a0] sm:$0xff]  ;;  %v2564_v14 = vpack.c.bf16 %v370_v7, %v369_v6 }
  0xf2   : > { %655 = vst [vmem:[#allocation3 + $0x8] sm:$0xff] %v2554_v47  ;;  %421 = vst [vmem:[%s3504_s9 + $0x120] sm:$0xff] %v357_v52  ;;  %v374_v13 = vld [vmem:[%s3577_s6 + $0x1a8] sm:$0xff]  ;;  %v375_v15 = vld [vmem:[%s3577_s6 + $0x1b0] sm:$0xff]  ;;  %v2565_v18 = vpack.c.bf16 %v372_v11, %v371_v8 }
  0xf3   : > { %422 = vst [vmem:[%s3504_s9 + $0x128] sm:$0xff] %v358_v53  ;;  %423 = vst [vmem:[%s3504_s9 + $0x130] sm:$0xff] %v359_v54  ;;  %v376_v16 = vld [vmem:[%s3577_s6 + $0x1b8] sm:$0xff]  ;;  %v377_v17 = vld [vmem:[%s3577_s6 + $0x1c0] sm:$0xff]  ;;  %v2566_v19 = vpack.c.bf16 %v374_v13, %v373_v12 }
  0xf4   : > { %656 = vst [vmem:[#allocation3 + $0x78] sm:$0xff] %v2555_v51  ;;  %424 = vst [vmem:[%s3504_s9 + $0x138] sm:$0xff] %v360_v57  ;;  %v378_v20 = vld [vmem:[%s3577_s6 + $0x1c8] sm:$0xff]  ;;  %v379_v21 = vld [vmem:[%s3577_s6 + $0x1d0] sm:$0xff]  ;;  %v2567_v23 = vpack.c.bf16 %v376_v16, %v375_v15 }
  0xf5   : > { %425 = vst [vmem:[%s3504_s9 + $0x140] sm:$0xff] %v361_v58  ;;  %426 = vst [vmem:[%s3504_s9 + $0x148] sm:$0xff] %v362_v59  ;;  %v380_v22 = vld [vmem:[%s3577_s6 + $0x1d8] sm:$0xff]  ;;  %v381_v24 = vld [vmem:[%s3577_s6 + $0x1e0] sm:$0xff]  ;;  %v2568_v27 = vpack.c.bf16 %v378_v20, %v377_v17 }
  0xf6   : > { %657 = vst [vmem:[#allocation3 + $0x38] sm:$0xff] %v2556_v55  ;;  %658 = vst [vmem:[#allocation3 + $0x58] sm:$0xff] %v2557_v56  ;;  %v382_v25 = vld [vmem:[%s3577_s6 + $0x1e8] sm:$0xff]  ;;  %v383_v26 = vld [vmem:[%s3577_s6 + $0x1f0] sm:$0xff]  ;;  %v2569_v28 = vpack.c.bf16 %v380_v22, %v379_v21 }
  0xf7   : > { %427 = vst [vmem:[%s3504_s9 + $0x150] sm:$0xff] %v363_v61  ;;  %428 = vst [vmem:[%s3504_s9 + $0x158] sm:$0xff] %v364_v62  ;;  %v384_v29 = vld [vmem:[%s3577_s6 + $0x1f8] sm:$0xff]  ;;  %v2570_v30 = vpack.c.bf16 %v382_v25, %v381_v24 }
  0xf8   : > { %429 = vst [vmem:[%s3504_s9 + $0x160] sm:$0xff] %v365_v63  ;;  %659 = vst [vmem:[#allocation3 + $0x40] sm:$0xff] %v2558_v60  ;;  %v2571_v31 = vpack.c.bf16 %v384_v29, %v383_v26 }
  0xf9   : > { %430 = vst [vmem:[%s3504_s9 + $0x168] sm:$0xff] %v366_v2  ;;  %431 = vst [vmem:[%s3504_s9 + $0x170] sm:$0xff] %v367_v3 }
  0xfa   : > { %432 = vst [vmem:[%s3504_s9 + $0x178] sm:$0xff] %v368_v4  ;;  %660 = vst [vmem:[#allocation3 + $0xc8] sm:$0xff] %v2559_v0 }
  0xfb   : > { %661 = vst [vmem:[#allocation3 + $0xe0] sm:$0xff] %v2560_v1  ;;  %433 = vst [vmem:[%s3504_s9 + $0x180] sm:$0xff] %v369_v6 }
  0xfc   : > { %434 = vst [vmem:[%s3504_s9 + $0x188] sm:$0xff] %v370_v7  ;;  %435 = vst [vmem:[%s3504_s9 + $0x190] sm:$0xff] %v371_v8 }
  0xfd   : > { %662 = vst [vmem:[#allocation3 + $0x90] sm:$0xff] %v2561_v5  ;;  %436 = vst [vmem:[%s3504_s9 + $0x198] sm:$0xff] %v372_v11 }
  0xfe   : > { %437 = vst [vmem:[%s3504_s9 + $0x1a0] sm:$0xff] %v373_v12  ;;  %438 = vst [vmem:[%s3504_s9 + $0x1a8] sm:$0xff] %v374_v13 }
  0xff   : > { %663 = vst [vmem:[#allocation3 + $0x70] sm:$0xff] %v2562_v9  ;;  %664 = vst [vmem:[#allocation3 + $0xc0] sm:$0xff] %v2563_v10 }
 0x100   : > { %439 = vst [vmem:[%s3504_s9 + $0x1b0] sm:$0xff] %v375_v15  ;;  %440 = vst [vmem:[%s3504_s9 + $0x1b8] sm:$0xff] %v376_v16 }
 0x101   : > { %441 = vst [vmem:[%s3504_s9 + $0x1c0] sm:$0xff] %v377_v17  ;;  %665 = vst [vmem:[#allocation3 + $0xa8] sm:$0xff] %v2564_v14 }
 0x102   : > { %442 = vst [vmem:[%s3504_s9 + $0x1c8] sm:$0xff] %v378_v20  ;;  %443 = vst [vmem:[%s3504_s9 + $0x1d0] sm:$0xff] %v379_v21 }
 0x103   : > { %444 = vst [vmem:[%s3504_s9 + $0x1d8] sm:$0xff] %v380_v22  ;;  %666 = vst [vmem:[#allocation3 + $0xd0] sm:$0xff] %v2565_v18 }
 0x104   : > { %667 = vst [vmem:[#allocation3 + $0x10] sm:$0xff] %v2566_v19  ;;  %445 = vst [vmem:[%s3504_s9 + $0x1e0] sm:$0xff] %v381_v24 }
 0x105   : > { %446 = vst [vmem:[%s3504_s9 + $0x1e8] sm:$0xff] %v382_v25  ;;  %447 = vst [vmem:[%s3504_s9 + $0x1f0] sm:$0xff] %v383_v26 }
 0x106   : > { %668 = vst [vmem:[#allocation3 + $0x28] sm:$0xff] %v2567_v23  ;;  %448 = vst [vmem:[%s3504_s9 + $0x1f8] sm:$0xff] %v384_v29 }
 0x107   : > { %669 = vst [vmem:[#allocation3 + $0xa0] sm:$0xff] %v2568_v27  ;;  %670 = vst [vmem:[#allocation3 + $0xf8] sm:$0xff] %v2569_v28 }
 0x108   : > { %671 = vst [vmem:[#allocation3 + $0x20] sm:$0xff] %v2570_v30  ;;  %672 = vst [vmem:[#allocation3 + $0x98] sm:$0xff] %v2571_v31 }
 0x109 PF: > { %v2821_v32 = vld [vmem:[%s3492_s17 + $0xe4] ss:$16 sps:$4 sm:$0xff]   ;;  %v2823_v33 = vld [vmem:[%s3492_s17 + $0xec] ss:$16 sps:$4 sm:$0xff]   ;;  %v2825_v34 = vld [vmem:[%s3492_s17 + $0xe0] ss:$16 sps:$4 sm:$0xff]  }
 0x10a   : > { %1249 = vmatprep.subr.bf16.mxu0 %v2821_v32  ;;  %v2826_v35 = vld [vmem:[%s3492_s17 + $0xe8] ss:$16 sps:$4 sm:$0xff]   ;;  %1442 = vmatprep.subr.bf16.mxu1 %v2823_v33  ;;  %v2827_v36 = vld [vmem:[%s3492_s17 + $0xc4] ss:$16 sps:$4 sm:$0xff]   ;;  %v2829_v37 = vld [vmem:[%s3492_s17 + $0xcc] ss:$16 sps:$4 sm:$0xff]  }
 0x10b   : > { %1250 = vmatpush1.bf16.msra.mxu0 %v2825_v34  ;;  %1443 = vmatpush1.bf16.msra.mxu1 %v2826_v35  ;;  %v2831_v38 = vld [vmem:[%s3492_s17 + $0xc0] ss:$16 sps:$4 sm:$0xff]   ;;  %v2832_v39 = vld [vmem:[%s3492_s17 + $0xc8] ss:$16 sps:$4 sm:$0xff]   ;;  %v2833_v40 = vld [vmem:[%s3492_s17 + $0xa4] ss:$16 sps:$4 sm:$0xff]  }
 0x10c   : > { %1251 = vmatprep.subr.bf16.mxu0 %v2827_v36  ;;  %1444 = vmatprep.subr.bf16.mxu1 %v2829_v37  ;;  %v2835_v41 = vld [vmem:[%s3492_s17 + $0xac] ss:$16 sps:$4 sm:$0xff]   ;;  %v2837_v42 = vld [vmem:[%s3492_s17 + $0xa0] ss:$16 sps:$4 sm:$0xff]   ;;  %v2838_v43 = vld [vmem:[%s3492_s17 + $0xa8] ss:$16 sps:$4 sm:$0xff]  }
 0x10d   : > { %v2839_v44 = vld [vmem:[%s3492_s17 + $0x84] ss:$16 sps:$4 sm:$0xff]   ;;  %v2841_v45 = vld [vmem:[%s3492_s17 + $0x8c] ss:$16 sps:$4 sm:$0xff]   ;;  %v2843_v46 = vld [vmem:[%s3492_s17 + $0x80] ss:$16 sps:$4 sm:$0xff]  }
 0x10e   : > { %v2844_v47 = vld [vmem:[%s3492_s17 + $0x88] ss:$16 sps:$4 sm:$0xff]   ;;  %v2845_v48 = vld [vmem:[%s3492_s17 + $0x64] ss:$16 sps:$4 sm:$0xff]   ;;  %v2847_v49 = vld [vmem:[%s3492_s17 + $0x6c] ss:$16 sps:$4 sm:$0xff]  }
 0x10f   : > { %1252 = vmatpush1.bf16.msra.mxu0 %v2831_v38  ;;  %1445 = vmatpush1.bf16.msra.mxu1 %v2832_v39  ;;  %v2849_v50 = vld [vmem:[%s3492_s17 + $0x60] ss:$16 sps:$4 sm:$0xff]   ;;  %v2850_v51 = vld [vmem:[%s3492_s17 + $0x68] ss:$16 sps:$4 sm:$0xff]   ;;  %v2851_v52 = vld [vmem:[%s3492_s17 + $0x44] ss:$16 sps:$4 sm:$0xff]  }
 0x110   : > { %1253 = vmatprep.subr.bf16.mxu0 %v2833_v40  ;;  %1446 = vmatprep.subr.bf16.mxu1 %v2835_v41  ;;  %v2853_v53 = vld [vmem:[%s3492_s17 + $0x4c] ss:$16 sps:$4 sm:$0xff]   ;;  %v2855_v54 = vld [vmem:[%s3492_s17 + $0x40] ss:$16 sps:$4 sm:$0xff]   ;;  %v2856_v55 = vld [vmem:[%s3492_s17 + $0x48] ss:$16 sps:$4 sm:$0xff]  }
 0x111   : > { %v2857_v56 = vld [vmem:[%s3492_s17 + $0x24] ss:$16 sps:$4 sm:$0xff]   ;;  %v2859_v57 = vld [vmem:[%s3492_s17 + $0x2c] ss:$16 sps:$4 sm:$0xff]   ;;  %v2861_v58 = vld [vmem:[%s3492_s17 + $0x20] ss:$16 sps:$4 sm:$0xff]  }
 0x112   : > { %v2862_v59 = vld [vmem:[%s3492_s17 + $0x28] ss:$16 sps:$4 sm:$0xff]   ;;  %v2863_v60 = vld [vmem:[%s3492_s17 + $0x4] ss:$16 sps:$4 sm:$0xff]   ;;  %v2865_v61 = vld [vmem:[%s3492_s17 + $0xc] ss:$16 sps:$4 sm:$0xff]  }
 0x113   : > { %1254 = vmatpush1.bf16.msra.mxu0 %v2837_v42  ;;  %1447 = vmatpush1.bf16.msra.mxu1 %v2838_v43  ;;  %v2867_v62 = vld [vmem:[%s3492_s17] ss:$16 sps:$4 sm:$0xff]   ;;  %v2868_v63 = vld [vmem:[%s3492_s17 + $0x8] ss:$16 sps:$4 sm:$0xff]   ;;  %v2869_v0 = vld [vmem:[%s3492_s17 + $0x1e4] ss:$16 sps:$4 sm:$0xff]  }
 0x114   : > { %1255 = vmatprep.subr.bf16.mxu0 %v2839_v44  ;;  %1448 = vmatprep.subr.bf16.mxu1 %v2841_v45  ;;  %v2871_v1 = vld [vmem:[%s3492_s17 + $0x1ec] ss:$16 sps:$4 sm:$0xff]   ;;  %v2873_v2 = vld [vmem:[%s3492_s17 + $0x1e0] ss:$16 sps:$4 sm:$0xff]   ;;  %v2874_v3 = vld [vmem:[%s3492_s17 + $0x1e8] ss:$16 sps:$4 sm:$0xff]  }
 0x115   : > { %v2875_v4 = vld [vmem:[%s3492_s17 + $0x1c4] ss:$16 sps:$4 sm:$0xff]   ;;  %v2877_v5 = vld [vmem:[%s3492_s17 + $0x1cc] ss:$16 sps:$4 sm:$0xff]   ;;  %v2879_v6 = vld [vmem:[%s3492_s17 + $0x1c0] ss:$16 sps:$4 sm:$0xff]  }
 0x116   : > { %v2880_v7 = vld [vmem:[%s3492_s17 + $0x1c8] ss:$16 sps:$4 sm:$0xff]   ;;  %v2881_v8 = vld [vmem:[%s3492_s17 + $0x1a4] ss:$16 sps:$4 sm:$0xff]   ;;  %v2883_v9 = vld [vmem:[%s3492_s17 + $0x1ac] ss:$16 sps:$4 sm:$0xff]  }
 0x117   : > { %1256 = vmatpush1.bf16.msra.mxu0 %v2843_v46  ;;  %1449 = vmatpush1.bf16.msra.mxu1 %v2844_v47  ;;  %v2885_v10 = vld [vmem:[%s3492_s17 + $0x1a0] ss:$16 sps:$4 sm:$0xff]   ;;  %v2886_v11 = vld [vmem:[%s3492_s17 + $0x1a8] ss:$16 sps:$4 sm:$0xff]   ;;  %v2887_v12 = vld [vmem:[%s3492_s17 + $0x184] ss:$16 sps:$4 sm:$0xff]  }
 0x118   : > { %1257 = vmatprep.subr.bf16.mxu0 %v2845_v48  ;;  %1450 = vmatprep.subr.bf16.mxu1 %v2847_v49  ;;  %v2889_v13 = vld [vmem:[%s3492_s17 + $0x18c] ss:$16 sps:$4 sm:$0xff]   ;;  %v2919_v14 = vld [vmem:[#allocation3 + $0xb4] ss:$-176 sps:$4 sm:$0xff]   ;;  %v2891_v15 = vld [vmem:[%s3492_s17 + $0x180] ss:$16 sps:$4 sm:$0xff]  }
 0x119   : > { %v2892_v16 = vld [vmem:[%s3492_s17 + $0x188] ss:$16 sps:$4 sm:$0xff]   ;;  %v2893_v17 = vld [vmem:[%s3492_s17 + $0x164] ss:$16 sps:$4 sm:$0xff]   ;;  %v2895_v18 = vld [vmem:[%s3492_s17 + $0x16c] ss:$16 sps:$4 sm:$0xff]   ;;  %1281 = vmatprep.mubr.bf16.mxu0 %v2919_v14  ;;  %1474 = vmatprep.mubr.bf16.mxu1 %v2919_v14 }
 0x11a   : > { %v2897_v19 = vld [vmem:[%s3492_s17 + $0x160] ss:$16 sps:$4 sm:$0xff]   ;;  %v2898_v20 = vld [vmem:[%s3492_s17 + $0x168] ss:$16 sps:$4 sm:$0xff]   ;;  %v2899_v21 = vld [vmem:[%s3492_s17 + $0x144] ss:$16 sps:$4 sm:$0xff]  }
 0x11b   : > { %1258 = vmatpush1.bf16.msra.mxu0 %v2849_v50  ;;  %1451 = vmatpush1.bf16.msra.mxu1 %v2850_v51  ;;  %v2901_v22 = vld [vmem:[%s3492_s17 + $0x14c] ss:$16 sps:$4 sm:$0xff]   ;;  %v2903_v23 = vld [vmem:[%s3492_s17 + $0x140] ss:$16 sps:$4 sm:$0xff]   ;;  %v2904_v24 = vld [vmem:[%s3492_s17 + $0x148] ss:$16 sps:$4 sm:$0xff]  }
 0x11c   : > { %1259 = vmatprep.subr.bf16.mxu0 %v2851_v52  ;;  %1452 = vmatprep.subr.bf16.mxu1 %v2853_v53  ;;  %v2905_v25 = vld [vmem:[%s3492_s17 + $0x124] ss:$16 sps:$4 sm:$0xff]   ;;  %v2907_v26 = vld [vmem:[%s3492_s17 + $0x12c] ss:$16 sps:$4 sm:$0xff]   ;;  %v2909_v27 = vld [vmem:[%s3492_s17 + $0x120] ss:$16 sps:$4 sm:$0xff]  }
 0x11d   : > { %v2910_v28 = vld [vmem:[%s3492_s17 + $0x128] ss:$16 sps:$4 sm:$0xff]   ;;  %v2911_v29 = vld [vmem:[%s3492_s17 + $0x104] ss:$16 sps:$4 sm:$0xff]   ;;  %v2913_v30 = vld [vmem:[%s3492_s17 + $0x10c] ss:$16 sps:$4 sm:$0xff]  }
 0x11e   : > { %v2915_v31 = vld [vmem:[%s3492_s17 + $0x100] ss:$16 sps:$4 sm:$0xff]   ;;  %v2916_v32 = vld [vmem:[%s3492_s17 + $0x108] ss:$16 sps:$4 sm:$0xff]   ;;  %v2920_v38 = vld [vmem:[#allocation3 + $0x54] ss:$24 sps:$4 sm:$0xff]  }
 0x11f   : > { %1260 = vmatpush1.bf16.msra.mxu0 %v2855_v54  ;;  %1453 = vmatpush1.bf16.msra.mxu1 %v2856_v55  ;;  %v675_v33 = vld [vmem:[#allocation3 + $0xd8] sm:$0xff]  ;;  %v2917_v35 = vld [vmem:[#allocation3 + $0xb0] ss:$-176 sps:$4 sm:$0xff]   ;;  %v2923_v40 = vld [vmem:[#allocation3 + $0x34] ss:$24 sps:$4 sm:$0xff]   ;;  %s2096_s17 = smul.u32 3, %s3229_s28 }
 0x120   : > { %1261 = vmatprep.subr.bf16.mxu0 %v2857_v56  ;;  %1454 = vmatprep.subr.bf16.mxu1 %v2859_v57  ;;  %v676_v34 = vld [vmem:[#allocation3 + $0x18] sm:$0xff]  ;;  %v2922_v39 = vld [vmem:[#allocation3 + $0x50] ss:$24 sps:$4 sm:$0xff]   ;;  %v2926_v42 = vld [vmem:[#allocation3 + $0x84] ss:$8 sps:$4 sm:$0xff]   ;;  %s2105_s25 = sshll.u32 %s3504_s9, 4  ;;  %s3782_s25 = int_to_ptr.vmem [resolvable:$true] %s2105_s25 }
 0x121   : > { %v2368_v36 = vcombine.high %v675_v33, %v676_v34  ;;  %v2367_v37 = vcombine.low %v675_v33, %v676_v34  ;;  %v2925_v41 = vld [vmem:[#allocation3 + $0x30] ss:$24 sps:$4 sm:$0xff]   ;;  %v2929_v44 = vld [vmem:[#allocation3 + $0xec] ss:$-48 sps:$4 sm:$0xff]   ;;  %v2932_v46 = vld [vmem:[#allocation3 + $0x64] ss:$144 sps:$4 sm:$0xff]   ;;  %s3773_s16 = sadd.s32 %s3225_s27, %s2096_s17 }
 0x122   : > { %v2928_v43 = vld [vmem:[#allocation3 + $0x80] ss:$8 sps:$4 sm:$0xff]   ;;  %v2935_v48 = vld [vmem:[#allocation3 + $0xc] ss:$112 sps:$4 sm:$0xff]   ;;  %v2941_v56 = vld [vmem:[#allocation3 + $0xe4] ss:$-80 sps:$4 sm:$0xff]  }
 0x123   : > { %1262 = vmatpush1.bf16.msra.mxu0 %v2861_v58  ;;  %1455 = vmatpush1.bf16.msra.mxu1 %v2862_v59  ;;  %v2931_v45 = vld [vmem:[#allocation3 + $0xe8] ss:$-48 sps:$4 sm:$0xff]   ;;  %v2934_v47 = vld [vmem:[#allocation3 + $0x60] ss:$144 sps:$4 sm:$0xff]   ;;  %v2938_v54 = vld [vmem:[#allocation3 + $0x44] ss:$136 sps:$4 sm:$0xff]  }
 0x124   : > { %1263 = vmatprep.subr.bf16.mxu0 %v2863_v60  ;;  %1456 = vmatprep.subr.bf16.mxu1 %v2865_v61  ;;  %v689_v49 = vld [vmem:[#allocation3 + $0x38] sm:$0xff]  ;;  %v2940_v55 = vld [vmem:[#allocation3 + $0x40] ss:$136 sps:$4 sm:$0xff]   ;;  %v2944_v58 = vld [vmem:[#allocation3 + $0x74] ss:$80 sps:$4 sm:$0xff]   ;;  %s2637_s5 = sshll.u32 %s3773_s16, 13 }
 0x125   : > { %v690_v50 = vld [vmem:[#allocation3 + $0x58] sm:$0xff]  ;;  %v2943_v57 = vld [vmem:[#allocation3 + $0xe0] ss:$-80 sps:$4 sm:$0xff]   ;;  %v2947_v60 = vld [vmem:[#allocation3 + $0xac] ss:$40 sps:$4 sm:$0xff]   ;;  %s3780_s29 = scalar_lea.hbm %s3977_s3, %s2637_s5  ;;  %s4043_s27 = sand.u32 1, %s3201_s22  }
 0x126   : > { %v2937_v51 = vld [vmem:[#allocation3 + $0x8] ss:$112 sps:$4 sm:$0xff]   ;;  %v2382_v52 = vcombine.high %v689_v49, %v690_v50  ;;  %v2381_v53 = vcombine.low %v689_v49, %v690_v50  ;;  %v2946_v59 = vld [vmem:[#allocation3 + $0x70] ss:$80 sps:$4 sm:$0xff]   ;;  %s3786_s28 = scalar_lea.sflag [#allocation9], %s4043_s27  ;;  %s3039_s9 = scalar_lea.vmem %s3782_s25, 8192 }
 0x127   : > { %1264 = vmatpush1.bf16.msra.mxu0 %v2867_v62  ;;  %1457 = vmatpush1.bf16.msra.mxu1 %v2868_v63  ;;  %v2949_v61 = vld [vmem:[#allocation3 + $0xa8] ss:$40 sps:$4 sm:$0xff]   ;;  %v2950_v62 = vld [vmem:[#allocation3 + $0x14] ss:$24 sps:$4 sm:$0xff]   ;;  %p3040_p3 = scmp.ne.s32.totalorder %s3782_s25, %s3039_s9  ;;  %s3270_s15 = smov [#allocation10]  }
 0x128   : > { %1265 = vmatprep.subr.bf16.mxu0 %v2869_v0  ;;  %1458 = vmatprep.subr.bf16.mxu1 %v2871_v1  ;;  %v2952_v63 = vld [vmem:[#allocation3 + $0x10] ss:$24 sps:$4 sm:$0xff]   ;;  %v2953_v0 = vld [vmem:[#allocation3 + $0xa4] ss:$88 sps:$4 sm:$0xff]   ;;  %v2955_v1 = vld [vmem:[#allocation3 + $0xa0] ss:$88 sps:$4 sm:$0xff]  }
 0x129   : > { %p3041_p4 = pnand %p3040_p3, %p3439_p0  ;;  %s3043_s10 = sshll.u32 %s3270_s15, 4  ;;  %s3044_s10 = int_to_ptr.vmem [resolvable:$false] %s3043_s10 }
 0x12a   : > { %s3045_s20 = scalar_lea.vmem %s3044_s10, 16384  ;;  %p3046_p5 = scmp.lt.s32.totalorder %s3782_s25, %s3044_s10 }
 0x12b   : > { %1266 = vmatpush2.bf16.msra.mxu0 %v2873_v2  ;;  %1459 = vmatpush2.bf16.msra.mxu1 %v2874_v3  ;;  %v2956_v2 = vld [vmem:[#allocation3 + $0x24] ss:$120 sps:$4 sm:$0xff]   ;;  %v2958_v3 = vld [vmem:[#allocation3 + $0x20] ss:$120 sps:$4 sm:$0xff]   ;;  %p3042_p6 = pneg %p3041_p4  ;;  %p3047_p10 = scmp.lt.s32.totalorder %s3045_s20, %s3039_s9 }
 0x12c   : > { %1267 = vmatprep.subr.bf16.mxu0 %v2875_v4  ;;  %1460 = vmatprep.subr.bf16.mxu1 %v2877_v5 }
 0x12d   : > { %p3048_p12 = por %p3047_p10, %p3046_p5 }
 0x12f   : > { %1268 = vmatpush2.bf16.msra.mxu0 %v2879_v6  ;;  %1461 = vmatpush2.bf16.msra.mxu1 %v2880_v7  ;;  %p3049_p2 = pnand %p3048_p12, %p3042_p6 }
 0x130   : > { %1269 = vmatprep.subr.bf16.mxu0 %v2881_v8  ;;  %1462 = vmatprep.subr.bf16.mxu1 %v2883_v9 }
 0x133   : > { %1270 = vmatpush2.bf16.msra.mxu0 %v2885_v10  ;;  %1463 = vmatpush2.bf16.msra.mxu1 %v2886_v11 }
 0x134   : > { %1271 = vmatprep.subr.bf16.mxu0 %v2887_v12  ;;  %1464 = vmatprep.subr.bf16.mxu1 %v2889_v13 }
 0x137   : > { %1272 = vmatpush2.bf16.msra.mxu0 %v2891_v15  ;;  %1465 = vmatpush2.bf16.msra.mxu1 %v2892_v16 }
 0x138   : > { %1273 = vmatprep.subr.bf16.mxu0 %v2893_v17  ;;  %1466 = vmatprep.subr.bf16.mxu1 %v2895_v18 }
 0x13b   : > { %1274 = vmatpush2.bf16.msra.mxu0 %v2897_v19  ;;  %1467 = vmatpush2.bf16.msra.mxu1 %v2898_v20 }
 0x13c   : > { %1275 = vmatprep.subr.bf16.mxu0 %v2899_v21  ;;  %1468 = vmatprep.subr.bf16.mxu1 %v2901_v22 }
 0x13f   : > { %1276 = vmatpush2.bf16.msra.mxu0 %v2903_v23  ;;  %1469 = vmatpush2.bf16.msra.mxu1 %v2904_v24 }
 0x140   : > { %1277 = vmatprep.subr.bf16.mxu0 %v2905_v25  ;;  %1470 = vmatprep.subr.bf16.mxu1 %v2907_v26 }
 0x143   : > { %1278 = vmatpush2.bf16.msra.mxu0 %v2909_v27  ;;  %1471 = vmatpush2.bf16.msra.mxu1 %v2910_v28 }
 0x144   : > { %1279 = vmatprep.subr.bf16.mxu0 %v2911_v29  ;;  %1472 = vmatprep.subr.bf16.mxu1 %v2913_v30 }
 0x147   : > { %1280 = vmatpush2.bf16.msra.mxu0 %v2915_v31  ;;  %1473 = vmatpush2.bf16.msra.mxu1 %v2916_v32 }
 0x14a   : > { %1282 = vmatmul.mubr.bf16.vlgmr.msra.gmra.mxu0 %v2917_v35  ;;  %1475 = vmatmul.mubr.bf16.vlgmr.msra.gmra.mxu1 %v2917_v35 }
 0x14b   : > { %1291 = vmatprep.mubr.bf16.mxu0 %v2368_v36  ;;  %1484 = vmatprep.mubr.bf16.mxu1 %v2368_v36 }
 0x152   : > { %1292 = vmatmul.mubr.bf16.gmra.mxu0 %v2367_v37  ;;  %1485 = vmatmul.mubr.bf16.gmra.mxu1 %v2367_v37 }
 0x153   : > { %1301 = vmatprep.mubr.bf16.mxu0 %v2920_v38  ;;  %1494 = vmatprep.mubr.bf16.mxu1 %v2920_v38 }
 0x15a   : > { %1302 = vmatmul.mubr.bf16.gmra.mxu0 %v2922_v39  ;;  %1495 = vmatmul.mubr.bf16.gmra.mxu1 %v2922_v39 }
 0x15b   : > { %1311 = vmatprep.mubr.bf16.mxu0 %v2923_v40  ;;  %1504 = vmatprep.mubr.bf16.mxu1 %v2923_v40 }
 0x162   : > { %1312 = vmatmul.mubr.bf16.gmra.mxu0 %v2925_v41  ;;  %1505 = vmatmul.mubr.bf16.gmra.mxu1 %v2925_v41 }
 0x163   : > { %1321 = vmatprep.mubr.bf16.mxu0 %v2926_v42  ;;  %1514 = vmatprep.mubr.bf16.mxu1 %v2926_v42 }
 0x16a   : > { %1322 = vmatmul.mubr.bf16.gmra.mxu0 %v2928_v43  ;;  %1515 = vmatmul.mubr.bf16.gmra.mxu1 %v2928_v43 }
 0x16b   : > { %1331 = vmatprep.mubr.bf16.mxu0 %v2929_v44  ;;  %1524 = vmatprep.mubr.bf16.mxu1 %v2929_v44 }
 0x172   : > { %1332 = vmatmul.mubr.bf16.gmra.mxu0 %v2931_v45  ;;  %1525 = vmatmul.mubr.bf16.gmra.mxu1 %v2931_v45 }
 0x173   : > { %1341 = vmatprep.mubr.bf16.mxu0 %v2932_v46  ;;  %1534 = vmatprep.mubr.bf16.mxu1 %v2932_v46 }
 0x17a   : > { %1342 = vmatmul.mubr.bf16.gmra.mxu0 %v2934_v47  ;;  %1535 = vmatmul.mubr.bf16.gmra.mxu1 %v2934_v47 }
 0x17b   : > { %1351 = vmatprep.mubr.bf16.mxu0 %v2935_v48  ;;  %1544 = vmatprep.mubr.bf16.mxu1 %v2935_v48 }
 0x182   : > { %1352 = vmatmul.mubr.bf16.gmra.mxu0 %v2937_v51  ;;  %1545 = vmatmul.mubr.bf16.gmra.mxu1 %v2937_v51 }
 0x183   : > { %1361 = vmatprep.mubr.bf16.mxu0 %v2382_v52  ;;  %1554 = vmatprep.mubr.bf16.mxu1 %v2382_v52 }
 0x18a   : > { %1362 = vmatmul.mubr.bf16.gmra.mxu0 %v2381_v53  ;;  %1555 = vmatmul.mubr.bf16.gmra.mxu1 %v2381_v53 }
 0x18b   : > { %1371 = vmatprep.mubr.bf16.mxu0 %v2938_v54  ;;  %1564 = vmatprep.mubr.bf16.mxu1 %v2938_v54 }
 0x192   : > { %1372 = vmatmul.mubr.bf16.gmra.mxu0 %v2940_v55  ;;  %1565 = vmatmul.mubr.bf16.gmra.mxu1 %v2940_v55 }
 0x193   : > { %1381 = vmatprep.mubr.bf16.mxu0 %v2941_v56  ;;  %1574 = vmatprep.mubr.bf16.mxu1 %v2941_v56 }
 0x19a   : > { %1382 = vmatmul.mubr.bf16.gmra.mxu0 %v2943_v57  ;;  %1575 = vmatmul.mubr.bf16.gmra.mxu1 %v2943_v57 }
 0x19b   : > { %1391 = vmatprep.mubr.bf16.mxu0 %v2944_v58  ;;  %1584 = vmatprep.mubr.bf16.mxu1 %v2944_v58 }
 0x1a2   : > { %1392 = vmatmul.mubr.bf16.gmra.mxu0 %v2946_v59  ;;  %1585 = vmatmul.mubr.bf16.gmra.mxu1 %v2946_v59 }
 0x1a3   : > { %1401 = vmatprep.mubr.bf16.mxu0 %v2947_v60  ;;  %1594 = vmatprep.mubr.bf16.mxu1 %v2947_v60 }
 0x1aa   : > { %1402 = vmatmul.mubr.bf16.gmra.mxu0 %v2949_v61  ;;  %1595 = vmatmul.mubr.bf16.gmra.mxu1 %v2949_v61 }
 0x1ab   : > { %1411 = vmatprep.mubr.bf16.mxu0 %v2950_v62  ;;  %1604 = vmatprep.mubr.bf16.mxu1 %v2950_v62 }
 0x1b2   : > { %1412 = vmatmul.mubr.bf16.gmra.mxu0 %v2952_v63  ;;  %1605 = vmatmul.mubr.bf16.gmra.mxu1 %v2952_v63 }
 0x1b3   : > { %1421 = vmatprep.mubr.bf16.mxu0 %v2953_v0  ;;  %1614 = vmatprep.mubr.bf16.mxu1 %v2953_v0 }
 0x1ba   : > { %1422 = vmatmul.mubr.bf16.gmra.mxu0 %v2955_v1  ;;  %1615 = vmatmul.mubr.bf16.gmra.mxu1 %v2955_v1 }
 0x1bb   : > { %1431 = vmatprep.mubr.bf16.mxu0 %v2956_v2  ;;  %1624 = vmatprep.mubr.bf16.mxu1 %v2956_v2 }
 0x1c2   : > { %1432 = vmatmul.mubr.bf16.gmra.mxu0 %v2958_v3  ;;  %1625 = vmatmul.mubr.bf16.gmra.mxu1 %v2958_v3 }
 0x20a   : > { %v1283_v4 = vpop.f32.mrf.mxu0  ;;  %v1476_v5 = vpop.f32.mrf.mxu1 }
 0x20c   : > { %v1285_v6 = vpop.f32.mrf.mxu0  ;;  %v1478_v7 = vpop.f32.mrf.mxu1 }
 0x20d   : > { %v2572_v8 = vpack.c.bf16 %v1285_v6, %v1283_v4  ;;  %v2573_v9 = vpack.c.bf16 %v1478_v7, %v1476_v5 }
 0x20e   : > { %v1287_v10 = vpop.f32.mrf.mxu0  ;;  %v1480_v11 = vpop.f32.mrf.mxu1 }
 0x20f   : > { %3052 = shalt.err (!%p3049_p2)
}
 0x210   : > { %s3053_s12 = scalar_lea.hbm %s3780_s29, 8192  ;;  %s3057_s24 = scalar_lea.hbm %s3977_s3, 49152 }
 0x211   : > { %p3054_p9 = scmp.ne.s32.totalorder %s3780_s29, %s3053_s12  ;;  %p3058_p13 = scmp.lt.s32.totalorder %s3780_s29, %s3977_s3 }
 0x212   : > { %p3059_p1 = scmp.lt.s32.totalorder %s3057_s24, %s3053_s12 }
 0x213   : > { %p3055_p8 = pnand %p3054_p9, %p3439_p0 }
 0x214   : > { %p3060_p3 = por %p3059_p1, %p3058_p13 }
 0x215   : > { %p3056_p11 = pneg %p3055_p8 }
 0x217   : > { %p3061_p4 = pnand %p3060_p3, %p3056_p11 }
 0x219   : > { %3064 = shalt.err (!%p3061_p4)
}
 0x21a   : > { %s3271_s30 = smov 256   ;;  %s4044_s18 = sld [smem:[#allocation41_spill]]  ;;  %v1289_v12 = vpop.f32.mrf.mxu0  ;;  %v1482_v13 = vpop.f32.mrf.mxu1 }
 0x21b   : > { %s3272_s19 = smov 16   ;;  %v2574_v14 = vpack.c.bf16 %v1289_v12, %v1287_v10  ;;  %v2575_v15 = vpack.c.bf16 %v1482_v13, %v1480_v11  ;;  %s4045_s7 = sld [smem:[#allocation27_spill]] }
 0x21c   : > { %2641 = dma.vmem_to_hbm [thread:$0]  (%p3439_p0), %s3782_s25, 8192, %s3780_s29, %s3786_s28, %s3271_s30, %s3271_s30, %s3272_s19   ;;  %v1293_v16 = vpop.f32.mrf.mxu0  ;;  %v1486_v17 = vpop.f32.mrf.mxu1 }
 0x21d   : > { %s2638_s11 = sshll.u32 %s3773_s16, 9  ;;  %s4046_s14 = sld [smem:[#allocation21_spill]] }
 0x21e   : > { %v1295_v18 = vpop.f32.mrf.mxu0  ;;  %v1488_v19 = vpop.f32.mrf.mxu1  ;;  %s4048_s21 = sld [smem:[#allocation44_spill]]  ;;  %s3273_s15 = smov [#allocation11]  }
 0x21f   : > { %v2576_v20 = vpack.c.bf16 %v1295_v18, %v1293_v16  ;;  %v2577_v21 = vpack.c.bf16 %v1488_v19, %v1486_v17  ;;  %s3069_s10 = sshll.u32 %s3273_s15, 4  ;;  %s3070_s10 = int_to_ptr.vmem [resolvable:$false] %s3069_s10 }
 0x220   : > { %2019 = vst [vmem:[%s4044_s18] sm:$0xff] %v2572_v8  ;;  %2020 = vst [vmem:[%s4044_s18 + $0x8] sm:$0xff] %v2573_v9  ;;  %v1297_v22 = vpop.f32.mrf.mxu0  ;;  %v1490_v23 = vpop.f32.mrf.mxu1  ;;  %s2126_s16 = sshll.u32 %s4044_s18, 4  ;;  %s3071_s20 = scalar_lea.vmem %s3070_s10, 16384  ;;  %s3882_s16 = int_to_ptr.vmem [resolvable:$true] %s2126_s16 }
 0x221   : > { %2021 = vst [vmem:[%s4044_s18 + $0x10] sm:$0xff] %v2574_v14  ;;  %2022 = vst [vmem:[%s4044_s18 + $0x18] sm:$0xff] %v2575_v15  ;;  %s2531_s4 = sshll.u32 %s4045_s7, 2  ;;  %s3065_s28 = scalar_lea.vmem %s3882_s16, 8192 }
 0x222   : > { %2023 = vst [vmem:[%s4044_s18 + $0x20] sm:$0xff] %v2576_v20  ;;  %2024 = vst [vmem:[%s4044_s18 + $0x28] sm:$0xff] %v2577_v21  ;;  %v1299_v24 = vpop.f32.mrf.mxu0  ;;  %v1492_v25 = vpop.f32.mrf.mxu1  ;;  %s2123_s23 = sadd.s32 %s2638_s11, %s2531_s4  ;;  %p3066_p0 = scmp.ne.s32.totalorder %s3882_s16, %s3065_s28 }
 0x223   : > { %v2578_v26 = vpack.c.bf16 %v1299_v24, %v1297_v22  ;;  %v2579_v27 = vpack.c.bf16 %v1492_v25, %v1490_v23  ;;  %s2533_s6 = sshll.u32 %s2123_s23, 6  ;;  %s4050_s29 = sand.u32 1, %s4046_s14  }
 0x224   : > { %v1303_v28 = vpop.f32.mrf.mxu0  ;;  %v1496_v29 = vpop.f32.mrf.mxu1  ;;  %s4049_s9 = smov %s4048_s21  ;;  %s3880_s0 = scalar_lea.hbm %s4048_s21, %s2533_s6 }
 0x225   : > { %2025 = vst [vmem:[%s4044_s18 + $0x30] sm:$0xff] %v2578_v26  ;;  %2026 = vst [vmem:[%s4044_s18 + $0x38] sm:$0xff] %v2579_v27  ;;  %s3888_s27 = scalar_lea.sflag [#allocation12], %s4050_s29  ;;  %p3067_p6 = pnand %p3066_p0, %p3463_p7 }
 0x226   : > { %v1305_v30 = vpop.f32.mrf.mxu0  ;;  %v1498_v31 = vpop.f32.mrf.mxu1  ;;  %p3072_p10 = scmp.lt.s32.totalorder %s3882_s16, %s3070_s10  ;;  %p3073_p12 = scmp.lt.s32.totalorder %s3071_s20, %s3065_s28 }
 0x227   : > { %v2580_v32 = vpack.c.bf16 %v1305_v30, %v1303_v28  ;;  %v2581_v33 = vpack.c.bf16 %v1498_v31, %v1496_v29  ;;  %p3068_p5 = pneg %p3067_p6 }
 0x228   : > { %v1307_v34 = vpop.f32.mrf.mxu0  ;;  %v1500_v35 = vpop.f32.mrf.mxu1  ;;  %p3074_p2 = por %p3073_p12, %p3072_p10 }
 0x229   : > { %2027 = vst [vmem:[%s4044_s18 + $0x40] sm:$0xff] %v2580_v32  ;;  %2028 = vst [vmem:[%s4044_s18 + $0x48] sm:$0xff] %v2581_v33 }
 0x22a   : > { %v1309_v36 = vpop.f32.mrf.mxu0  ;;  %v1502_v37 = vpop.f32.mrf.mxu1  ;;  %p3075_p9 = pnand %p3074_p2, %p3068_p5 }
 0x22b   : > { %v2582_v38 = vpack.c.bf16 %v1309_v36, %v1307_v34  ;;  %v2583_v39 = vpack.c.bf16 %v1502_v37, %v1500_v35 }
 0x22c   : > { %v1313_v40 = vpop.f32.mrf.mxu0  ;;  %v1506_v41 = vpop.f32.mrf.mxu1 }
 0x22d   : > { %2029 = vst [vmem:[%s4044_s18 + $0x50] sm:$0xff] %v2582_v38  ;;  %2030 = vst [vmem:[%s4044_s18 + $0x58] sm:$0xff] %v2583_v39 }
 0x22e   : > { %v1315_v42 = vpop.f32.mrf.mxu0  ;;  %v1508_v43 = vpop.f32.mrf.mxu1 }
 0x22f   : > { %v2584_v44 = vpack.c.bf16 %v1315_v42, %v1313_v40  ;;  %v2585_v45 = vpack.c.bf16 %v1508_v43, %v1506_v41 }
 0x230   : > { %v1317_v46 = vpop.f32.mrf.mxu0  ;;  %v1510_v47 = vpop.f32.mrf.mxu1 }
 0x231   : > { %2031 = vst [vmem:[%s4044_s18 + $0x60] sm:$0xff] %v2584_v44  ;;  %2032 = vst [vmem:[%s4044_s18 + $0x68] sm:$0xff] %v2585_v45 }
 0x232   : > { %v1319_v48 = vpop.f32.mrf.mxu0  ;;  %v1512_v49 = vpop.f32.mrf.mxu1 }
 0x233   : > { %v2586_v50 = vpack.c.bf16 %v1319_v48, %v1317_v46  ;;  %v2587_v51 = vpack.c.bf16 %v1512_v49, %v1510_v47 }
 0x234   : > { %v1323_v52 = vpop.f32.mrf.mxu0  ;;  %v1516_v53 = vpop.f32.mrf.mxu1 }
 0x235   : > { %2033 = vst [vmem:[%s4044_s18 + $0x70] sm:$0xff] %v2586_v50  ;;  %2034 = vst [vmem:[%s4044_s18 + $0x78] sm:$0xff] %v2587_v51 }
 0x236   : > { %v1325_v54 = vpop.f32.mrf.mxu0  ;;  %v1518_v55 = vpop.f32.mrf.mxu1 }
 0x237   : > { %v2588_v56 = vpack.c.bf16 %v1325_v54, %v1323_v52  ;;  %v2589_v57 = vpack.c.bf16 %v1518_v55, %v1516_v53 }
 0x238   : > { %v1327_v58 = vpop.f32.mrf.mxu0  ;;  %v1520_v59 = vpop.f32.mrf.mxu1 }
 0x239   : > { %2035 = vst [vmem:[%s4044_s18 + $0x80] sm:$0xff] %v2588_v56  ;;  %2036 = vst [vmem:[%s4044_s18 + $0x88] sm:$0xff] %v2589_v57 }
 0x23a   : > { %v1329_v60 = vpop.f32.mrf.mxu0  ;;  %v1522_v61 = vpop.f32.mrf.mxu1 }
 0x23b   : > { %v2590_v62 = vpack.c.bf16 %v1329_v60, %v1327_v58  ;;  %v2591_v63 = vpack.c.bf16 %v1522_v61, %v1520_v59 }
 0x23c   : > { %v1333_v0 = vpop.f32.mrf.mxu0  ;;  %v1526_v1 = vpop.f32.mrf.mxu1 }
 0x23d   : > { %2037 = vst [vmem:[%s4044_s18 + $0x90] sm:$0xff] %v2590_v62  ;;  %2038 = vst [vmem:[%s4044_s18 + $0x98] sm:$0xff] %v2591_v63 }
 0x23e   : > { %v1335_v2 = vpop.f32.mrf.mxu0  ;;  %v1528_v3 = vpop.f32.mrf.mxu1 }
 0x23f   : > { %v2592_v4 = vpack.c.bf16 %v1335_v2, %v1333_v0  ;;  %v2593_v5 = vpack.c.bf16 %v1528_v3, %v1526_v1 }
 0x240   : > { %v1337_v6 = vpop.f32.mrf.mxu0  ;;  %v1530_v7 = vpop.f32.mrf.mxu1 }
 0x241   : > { %2039 = vst [vmem:[%s4044_s18 + $0xa0] sm:$0xff] %v2592_v4  ;;  %2040 = vst [vmem:[%s4044_s18 + $0xa8] sm:$0xff] %v2593_v5 }
 0x242   : > { %v1339_v8 = vpop.f32.mrf.mxu0  ;;  %v1532_v9 = vpop.f32.mrf.mxu1 }
 0x243   : > { %v2594_v10 = vpack.c.bf16 %v1339_v8, %v1337_v6  ;;  %v2595_v11 = vpack.c.bf16 %v1532_v9, %v1530_v7 }
 0x244   : > { %v1343_v12 = vpop.f32.mrf.mxu0  ;;  %v1536_v13 = vpop.f32.mrf.mxu1 }
 0x245   : > { %2041 = vst [vmem:[%s4044_s18 + $0xb0] sm:$0xff] %v2594_v10  ;;  %2042 = vst [vmem:[%s4044_s18 + $0xb8] sm:$0xff] %v2595_v11 }
 0x246   : > { %v1345_v14 = vpop.f32.mrf.mxu0  ;;  %v1538_v15 = vpop.f32.mrf.mxu1 }
 0x247   : > { %v2596_v16 = vpack.c.bf16 %v1345_v14, %v1343_v12  ;;  %v2597_v17 = vpack.c.bf16 %v1538_v15, %v1536_v13 }
 0x248   : > { %v1347_v18 = vpop.f32.mrf.mxu0  ;;  %v1540_v19 = vpop.f32.mrf.mxu1 }
 0x249   : > { %2043 = vst [vmem:[%s4044_s18 + $0xc0] sm:$0xff] %v2596_v16  ;;  %2044 = vst [vmem:[%s4044_s18 + $0xc8] sm:$0xff] %v2597_v17 }
 0x24a   : > { %v1349_v20 = vpop.f32.mrf.mxu0  ;;  %v1542_v21 = vpop.f32.mrf.mxu1 }
 0x24b   : > { %v2598_v22 = vpack.c.bf16 %v1349_v20, %v1347_v18  ;;  %v2599_v23 = vpack.c.bf16 %v1542_v21, %v1540_v19 }
 0x24c   : > { %v1353_v24 = vpop.f32.mrf.mxu0  ;;  %v1546_v25 = vpop.f32.mrf.mxu1 }
 0x24d   : > { %2045 = vst [vmem:[%s4044_s18 + $0xd0] sm:$0xff] %v2598_v22  ;;  %2046 = vst [vmem:[%s4044_s18 + $0xd8] sm:$0xff] %v2599_v23 }
 0x24e   : > { %v1355_v26 = vpop.f32.mrf.mxu0  ;;  %v1548_v27 = vpop.f32.mrf.mxu1 }
 0x24f   : > { %v2600_v28 = vpack.c.bf16 %v1355_v26, %v1353_v24  ;;  %v2601_v29 = vpack.c.bf16 %v1548_v27, %v1546_v25 }
 0x250   : > { %v1357_v30 = vpop.f32.mrf.mxu0  ;;  %v1550_v31 = vpop.f32.mrf.mxu1 }
 0x251   : > { %2047 = vst [vmem:[%s4044_s18 + $0xe0] sm:$0xff] %v2600_v28  ;;  %2048 = vst [vmem:[%s4044_s18 + $0xe8] sm:$0xff] %v2601_v29 }
 0x252   : > { %v1359_v32 = vpop.f32.mrf.mxu0  ;;  %v1552_v33 = vpop.f32.mrf.mxu1 }
 0x253   : > { %v2602_v34 = vpack.c.bf16 %v1359_v32, %v1357_v30  ;;  %v2603_v35 = vpack.c.bf16 %v1552_v33, %v1550_v31 }
 0x254   : > { %v1363_v36 = vpop.f32.mrf.mxu0  ;;  %v1556_v37 = vpop.f32.mrf.mxu1 }
 0x255   : > { %2049 = vst [vmem:[%s4044_s18 + $0xf0] sm:$0xff] %v2602_v34  ;;  %2050 = vst [vmem:[%s4044_s18 + $0xf8] sm:$0xff] %v2603_v35 }
 0x256   : > { %v1365_v38 = vpop.f32.mrf.mxu0  ;;  %v1558_v39 = vpop.f32.mrf.mxu1 }
 0x257   : > { %v2604_v40 = vpack.c.bf16 %v1365_v38, %v1363_v36  ;;  %v2605_v41 = vpack.c.bf16 %v1558_v39, %v1556_v37 }
 0x258   : > { %v1367_v42 = vpop.f32.mrf.mxu0  ;;  %v1560_v43 = vpop.f32.mrf.mxu1 }
 0x259   : > { %2051 = vst [vmem:[%s4044_s18 + $0x100] sm:$0xff] %v2604_v40  ;;  %2052 = vst [vmem:[%s4044_s18 + $0x108] sm:$0xff] %v2605_v41 }
 0x25a   : > { %v1369_v44 = vpop.f32.mrf.mxu0  ;;  %v1562_v45 = vpop.f32.mrf.mxu1 }
 0x25b   : > { %v2606_v46 = vpack.c.bf16 %v1369_v44, %v1367_v42  ;;  %v2607_v47 = vpack.c.bf16 %v1562_v45, %v1560_v43 }
 0x25c   : > { %v1373_v48 = vpop.f32.mrf.mxu0  ;;  %v1566_v49 = vpop.f32.mrf.mxu1 }
 0x25d   : > { %2053 = vst [vmem:[%s4044_s18 + $0x110] sm:$0xff] %v2606_v46  ;;  %2054 = vst [vmem:[%s4044_s18 + $0x118] sm:$0xff] %v2607_v47 }
 0x25e   : > { %v1375_v50 = vpop.f32.mrf.mxu0  ;;  %v1568_v51 = vpop.f32.mrf.mxu1 }
 0x25f   : > { %v2608_v52 = vpack.c.bf16 %v1375_v50, %v1373_v48  ;;  %v2609_v53 = vpack.c.bf16 %v1568_v51, %v1566_v49 }
 0x260   : > { %v1377_v54 = vpop.f32.mrf.mxu0  ;;  %v1570_v55 = vpop.f32.mrf.mxu1 }
 0x261   : > { %2055 = vst [vmem:[%s4044_s18 + $0x120] sm:$0xff] %v2608_v52  ;;  %2056 = vst [vmem:[%s4044_s18 + $0x128] sm:$0xff] %v2609_v53 }
 0x262   : > { %v1379_v56 = vpop.f32.mrf.mxu0  ;;  %v1572_v57 = vpop.f32.mrf.mxu1 }
 0x263   : > { %v2610_v58 = vpack.c.bf16 %v1379_v56, %v1377_v54  ;;  %v2611_v59 = vpack.c.bf16 %v1572_v57, %v1570_v55 }
 0x264   : > { %v1383_v60 = vpop.f32.mrf.mxu0  ;;  %v1576_v61 = vpop.f32.mrf.mxu1 }
 0x265   : > { %2057 = vst [vmem:[%s4044_s18 + $0x130] sm:$0xff] %v2610_v58  ;;  %2058 = vst [vmem:[%s4044_s18 + $0x138] sm:$0xff] %v2611_v59 }
 0x266   : > { %v1385_v62 = vpop.f32.mrf.mxu0  ;;  %v1578_v63 = vpop.f32.mrf.mxu1 }
 0x267   : > { %v2612_v0 = vpack.c.bf16 %v1385_v62, %v1383_v60  ;;  %v2613_v1 = vpack.c.bf16 %v1578_v63, %v1576_v61 }
 0x268   : > { %v1387_v2 = vpop.f32.mrf.mxu0  ;;  %v1580_v3 = vpop.f32.mrf.mxu1 }
 0x269   : > { %2059 = vst [vmem:[%s4044_s18 + $0x140] sm:$0xff] %v2612_v0  ;;  %2060 = vst [vmem:[%s4044_s18 + $0x148] sm:$0xff] %v2613_v1 }
 0x26a   : > { %v1389_v4 = vpop.f32.mrf.mxu0  ;;  %v1582_v5 = vpop.f32.mrf.mxu1 }
 0x26b   : > { %v2614_v6 = vpack.c.bf16 %v1389_v4, %v1387_v2  ;;  %v2615_v7 = vpack.c.bf16 %v1582_v5, %v1580_v3 }
 0x26c   : > { %v1393_v8 = vpop.f32.mrf.mxu0  ;;  %v1586_v9 = vpop.f32.mrf.mxu1 }
 0x26d   : > { %2061 = vst [vmem:[%s4044_s18 + $0x150] sm:$0xff] %v2614_v6  ;;  %2062 = vst [vmem:[%s4044_s18 + $0x158] sm:$0xff] %v2615_v7 }
 0x26e   : > { %v1395_v10 = vpop.f32.mrf.mxu0  ;;  %v1588_v11 = vpop.f32.mrf.mxu1 }
 0x26f   : > { %v2616_v12 = vpack.c.bf16 %v1395_v10, %v1393_v8  ;;  %v2617_v13 = vpack.c.bf16 %v1588_v11, %v1586_v9 }
 0x270   : > { %v1397_v14 = vpop.f32.mrf.mxu0  ;;  %v1590_v15 = vpop.f32.mrf.mxu1 }
 0x271   : > { %2063 = vst [vmem:[%s4044_s18 + $0x160] sm:$0xff] %v2616_v12  ;;  %2064 = vst [vmem:[%s4044_s18 + $0x168] sm:$0xff] %v2617_v13 }
 0x272   : > { %v1399_v16 = vpop.f32.mrf.mxu0  ;;  %v1592_v17 = vpop.f32.mrf.mxu1 }
 0x273   : > { %v2618_v18 = vpack.c.bf16 %v1399_v16, %v1397_v14  ;;  %v2619_v19 = vpack.c.bf16 %v1592_v17, %v1590_v15 }
 0x274   : > { %v1403_v20 = vpop.f32.mrf.mxu0  ;;  %v1596_v21 = vpop.f32.mrf.mxu1 }
 0x275   : > { %2065 = vst [vmem:[%s4044_s18 + $0x170] sm:$0xff] %v2618_v18  ;;  %2066 = vst [vmem:[%s4044_s18 + $0x178] sm:$0xff] %v2619_v19 }
 0x276   : > { %v1405_v22 = vpop.f32.mrf.mxu0  ;;  %v1598_v23 = vpop.f32.mrf.mxu1 }
 0x277   : > { %v2620_v24 = vpack.c.bf16 %v1405_v22, %v1403_v20  ;;  %v2621_v25 = vpack.c.bf16 %v1598_v23, %v1596_v21 }
 0x278   : > { %v1407_v26 = vpop.f32.mrf.mxu0  ;;  %v1600_v27 = vpop.f32.mrf.mxu1 }
 0x279   : > { %2067 = vst [vmem:[%s4044_s18 + $0x180] sm:$0xff] %v2620_v24  ;;  %2068 = vst [vmem:[%s4044_s18 + $0x188] sm:$0xff] %v2621_v25 }
 0x27a   : > { %v1409_v28 = vpop.f32.mrf.mxu0  ;;  %v1602_v29 = vpop.f32.mrf.mxu1 }
 0x27b   : > { %v2622_v30 = vpack.c.bf16 %v1409_v28, %v1407_v26  ;;  %v2623_v31 = vpack.c.bf16 %v1602_v29, %v1600_v27 }
 0x27c   : > { %v1413_v32 = vpop.f32.mrf.mxu0  ;;  %v1606_v33 = vpop.f32.mrf.mxu1 }
 0x27d   : > { %2069 = vst [vmem:[%s4044_s18 + $0x190] sm:$0xff] %v2622_v30  ;;  %2070 = vst [vmem:[%s4044_s18 + $0x198] sm:$0xff] %v2623_v31 }
 0x27e   : > { %v1415_v34 = vpop.f32.mrf.mxu0  ;;  %v1608_v35 = vpop.f32.mrf.mxu1 }
 0x27f   : > { %v2624_v36 = vpack.c.bf16 %v1415_v34, %v1413_v32  ;;  %v2625_v37 = vpack.c.bf16 %v1608_v35, %v1606_v33 }
 0x280   : > { %v1417_v38 = vpop.f32.mrf.mxu0  ;;  %v1610_v39 = vpop.f32.mrf.mxu1 }
 0x281   : > { %2071 = vst [vmem:[%s4044_s18 + $0x1a0] sm:$0xff] %v2624_v36  ;;  %2072 = vst [vmem:[%s4044_s18 + $0x1a8] sm:$0xff] %v2625_v37 }
 0x282   : > { %v1419_v40 = vpop.f32.mrf.mxu0  ;;  %v1612_v41 = vpop.f32.mrf.mxu1 }
 0x283   : > { %v2626_v42 = vpack.c.bf16 %v1419_v40, %v1417_v38  ;;  %v2627_v43 = vpack.c.bf16 %v1612_v41, %v1610_v39 }
 0x284   : > { %v1423_v44 = vpop.f32.mrf.mxu0  ;;  %v1616_v45 = vpop.f32.mrf.mxu1 }
 0x285   : > { %2073 = vst [vmem:[%s4044_s18 + $0x1b0] sm:$0xff] %v2626_v42  ;;  %2074 = vst [vmem:[%s4044_s18 + $0x1b8] sm:$0xff] %v2627_v43 }
 0x286   : > { %v1425_v46 = vpop.f32.mrf.mxu0  ;;  %v1618_v47 = vpop.f32.mrf.mxu1 }
 0x287   : > { %v2628_v48 = vpack.c.bf16 %v1425_v46, %v1423_v44  ;;  %v2629_v49 = vpack.c.bf16 %v1618_v47, %v1616_v45 }
 0x288   : > { %v1427_v50 = vpop.f32.mrf.mxu0  ;;  %v1620_v51 = vpop.f32.mrf.mxu1 }
 0x289   : > { %2075 = vst [vmem:[%s4044_s18 + $0x1c0] sm:$0xff] %v2628_v48  ;;  %2076 = vst [vmem:[%s4044_s18 + $0x1c8] sm:$0xff] %v2629_v49 }
 0x28a   : > { %v1429_v52 = vpop.f32.mrf.mxu0  ;;  %v1622_v53 = vpop.f32.mrf.mxu1 }
 0x28b   : > { %v2630_v54 = vpack.c.bf16 %v1429_v52, %v1427_v50  ;;  %v2631_v55 = vpack.c.bf16 %v1622_v53, %v1620_v51 }
 0x28c   : > { %v1433_v56 = vpop.f32.mrf.mxu0  ;;  %v1626_v57 = vpop.f32.mrf.mxu1 }
 0x28d   : > { %2077 = vst [vmem:[%s4044_s18 + $0x1d0] sm:$0xff] %v2630_v54  ;;  %2078 = vst [vmem:[%s4044_s18 + $0x1d8] sm:$0xff] %v2631_v55 }
 0x28e   : > { %v1435_v58 = vpop.f32.mrf.mxu0  ;;  %v1628_v59 = vpop.f32.mrf.mxu1 }
 0x28f   : > { %v2632_v60 = vpack.c.bf16 %v1435_v58, %v1433_v56  ;;  %v2633_v61 = vpack.c.bf16 %v1628_v59, %v1626_v57 }
 0x290   : > { %v1437_v62 = vpop.f32.mrf.mxu0  ;;  %v1630_v63 = vpop.f32.mrf.mxu1 }
 0x291   : > { %2079 = vst [vmem:[%s4044_s18 + $0x1e0] sm:$0xff] %v2632_v60  ;;  %2080 = vst [vmem:[%s4044_s18 + $0x1e8] sm:$0xff] %v2633_v61 }
 0x292   : > { %v1439_v0 = vpop.f32.mrf.mxu0  ;;  %v1632_v1 = vpop.f32.mrf.mxu1 }
 0x293   : > { %v2634_v2 = vpack.c.bf16 %v1439_v0, %v1437_v62  ;;  %v2635_v3 = vpack.c.bf16 %v1632_v1, %v1630_v63 }
 0x295   : > { %2081 = vst [vmem:[%s4044_s18 + $0x1f0] sm:$0xff] %v2634_v2  ;;  %2082 = vst [vmem:[%s4044_s18 + $0x1f8] sm:$0xff] %v2635_v3 }
 0x296   : > { %3078 = shalt.err (!%p3075_p9)
}
 0x297   : > { %s3079_s12 = scalar_lea.hbm %s3880_s0, 8192  ;;  %s3083_s24 = scalar_lea.hbm %s4049_s9, 196608 }
 0x298   : > { %p3080_p8 = scmp.ne.s32.totalorder %s3880_s0, %s3079_s12  ;;  %p3084_p1 = scmp.lt.s32.totalorder %s3880_s0, %s4049_s9 }
 0x299   : > { %p3085_p3 = scmp.lt.s32.totalorder %s3083_s24, %s3079_s12 }
 0x29a   : > { %p3081_p11 = pnand %p3080_p8, %p3463_p7 }
 0x29b   : > { %p3086_p4 = por %p3085_p3, %p3084_p1 }
 0x29c   : > { %p3082_p13 = pneg %p3081_p11 }
 0x29e   : > { %p3087_p0 = pnand %p3086_p4, %p3082_p13 }
 0x2a0   : > { %3090 = shalt.err (!%p3087_p0)
}
 0x2a1   : > { %s3274_s18 = smov 1024  }
 0x2a2   : > { %2642 = dma.vmem_to_hbm [thread:$0]  (%p3463_p7), %s3882_s16, 8192, %s3880_s0, %s3888_s27, %s3271_s30, %s3274_s18, %s3272_s19  }
 0x2a3 PF: > { %s4051_s7 = sld [smem:[#allocation31_spill]] }
 0x2a4   : > { %s4052_s4 = sld [smem:[#allocation23_spill]] }
 0x2a5   : > { %s4053_s11 = sld [smem:[#allocation36_spill]] }
 0x2a9   : > { %p2657_p6 = scmp.ge.s32.totalorder %s4051_s7, 2 }
 0x2aa   : > { %s2141_s23 = sand.u32 1, %s4052_s4  }
 0x2ab   : > { %p4054_p5 = scmp.ne.s32.totalorder %s4053_s11, 0  ;;  %s2142_s14 = scalar_lea.sflag [#allocation9], %s2141_s23 }
 0x2ad   : > { %p2650_p10 = pnand %p2657_p6, %p4054_p5 }
 0x2af   : > { %p2651_p12 = pneg %p2650_p10 }
 0x2b1   : > { %3176 = dma.done.wait (%p2651_p12), %s2142_s14, 8192  }
 0x2b2   : > { %3178 = vsyncadd (%p2651_p12), %s2142_s14, 4294959104  ;;  %s4055_s6 = sld [smem:[#allocation20_spill]] }
 0x2b3   : > { %s4056_s17 = sld [smem:[#allocation40_spill]] }
 0x2b8   : > { %s2150_s5 = sand.u32 1, %s4055_s6  }
 0x2b9   : > { %p4057_p2 = scmp.ne.s32.totalorder %s4056_s17, 0  ;;  %s2151_s25 = scalar_lea.sflag [#allocation12], %s2150_s5 }
 0x2bb   : > { %p2653_p9 = pnand %p2657_p6, %p4057_p2 }
 0x2bd   : > { %p2654_p8 = pneg %p2653_p9 }
 0x2bf   : > { %3180 = dma.done.wait (%p2654_p8), %s2151_s25, 8192  }
 0x2c0   : > { %3182 = vsyncadd (%p2654_p8), %s2151_s25, 4294959104  ;;  %s28_s6 = sadd.s32 1, %s4051_s7   ;;  %s4059_s18 = sld [smem:[#allocation21_spill]] }
 0x2c1   : > { %p3921_p7 = scmp.ge.s32.totalorder %s28_s6, 26   ;;  %s4060_s19 = sld [smem:[#allocation22_spill]] }
 0x2c2   : > { %s4061_s20 = sld [smem:[#allocation38_spill]]  ;;  %s4074_s21 = smov %s3201_s22 }
 0x2c3   : > { %s4062_s16 = sld [smem:[#allocation24_spill]] }
 0x2c4   : > { %s4063_s0 = sld [smem:[#allocation37_spill]] }
 0x2c5   : > { %s4064_s23 = sld [smem:[#allocation25_spill]] }
 0x2c6   : > { %s4065_s24 = sld [smem:[#allocation26_spill]] }
 0x2c7   : > { %s4066_s25 = sld [smem:[#allocation34_spill]] }
 0x2c8   : > { %s4067_s26 = sld [smem:[#allocation28_spill]] }
 0x2c9   : > { %s4068_s27 = sld [smem:[#allocation29_spill]]  ;;  %s4075_s22 = smov %s4062_s16 }
 0x2ca   : > { %s4069_s28 = sld [smem:[#allocation30_spill]] }
 0x2cb   : > { %s4070_s29 = sld [smem:[#allocation32_spill]] }
 0x2cc   : > { %s4071_s15 = sld [smem:[#allocation33_spill]] }
 0x2cd   : > { %s4072_s5 = sld [smem:[#allocation35_spill]] }
 0x2ce   :  { %27 = sbr.rel (!%p3921_p7) target bundleno = 20 (0x14), region = 160 }
 0x2d2   : > { %s4076_s30 = smov %s4071_s15 }
 0x2d3   :  { %2156 = vsyncpa [#allocation8], 1 }
 0x2d4   :  { %2158 = vsyncpa [#allocation8 + $0x1], 1 }
 0x2d5   :  { %2159 = vsyncpa [#allocation9], 1 }
 0x2d6   :  { %2161 = vsyncpa [#allocation9 + $0x1], 1 }
 0x2d7   :  { %2162 = vsyncpa [#allocation12], 1 }
 0x2d8   :  { %2164 = vsyncpa [#allocation12 + $0x1], 1 }
 0x2d9   :  { %2165 = vsyncmov [#allocation4] }
 0x2dc   :  { %s2166_s12 = vpop.sfrf %2165 }
 0x2dd   :  { %p2536_p11 = scmp.ne.s32.totalorder %s2166_s12, 0 }
 0x2df   :  { %2170 = shalt.err (%p2536_p11)  }
 0x2e0   :  { %2172 = vsyncmov [#allocation4 + $0x1] }
 0x2e3   :  { %s2173_s13 = vpop.sfrf %2172 }
 0x2e4   :  { %p2537_p13 = scmp.ne.s32.totalorder %s2173_s13, 0 }
 0x2e6   :  { %2177 = shalt.err (%p2537_p13)  }

</bundles_post_ra>
